<compile_context>
chip_gen: v6e
topology: v6e:2x2x1
jax: 0.10.0
libtpu: 0.0.40
codegen_flags: <defaults>
</compile_context>

<pallas_src>
import jax
import jax.numpy as jnp
from jax import lax
from jax.experimental import pallas as pl
from jax.experimental.pallas import tpu as pltpu

EPS = float(jnp.finfo(jnp.float32).eps)  # matches torch.finfo(float32).eps
_LANE = 128
_MIB = 1024 * 1024


def _round_up(n, m):
    return -(-n // m) * m


def _pad_axis(a, axis, new_size):
    if a.shape[axis] == new_size:
        return a
    pads = [(0, 0)] * a.ndim
    pads[axis] = (0, new_size - a.shape[axis])
    return jnp.pad(a, pads)


# -----------------------------------------------------------------------------
# Kernel
# -----------------------------------------------------------------------------
def seg_lstm_kernel(x_ref, h0_ref, c0_ref, wih_ref, whh_ref, b_ref,
                    wproj_ref, bproj_ref, gamma_ref, beta_ref,
                    out_ref, hN_ref, cN_ref,
                    h_sc, c_sc, xw_ref, hseq_ref):
    """One (batch tile, time chunk): LSTM chunk + Linear proj + cLN('BTD') + residual.

    x_ref:    [BB, TT, D]  batch-first input chunk (f32)
    h0/c0:    [BB, Hs]     initial states (f32), feature dim padded to Hs
    wih:      [D, G4]      input->gates weight (bf16), gates packed i|f|g|o
    whh:      [Hs, G4]     hidden->gates weight (bf16)
    b:        [1, G4]      b_ih + b_hh (f32)
    wproj:    [Hs, D]      projection weight (bf16)
    bproj/gamma/beta: [1, D] (f32)
    out_ref:  [BB, TT, D]  x + cLN(proj(lstm(x)))     (f32)
    hN/cN:    [BB, Hs]     final states               (f32)
    scratch:  h_sc/c_sc [BB, Hs] f32 carries; xw [TT, BB, G4] bf16;
              hseq [TT, BB, Hs] bf16.
    """
    ti = pl.program_id(1)
    BB, TT, D = x_ref.shape
    Hs = h0_ref.shape[1]
    G4 = b_ref.shape[1]

    # ---- (0) (re)load carried state at the start of every batch tile.
    @pl.when(ti == 0)
    def _():
        h_sc[...] = h0_ref[...]
        c_sc[...] = c0_ref[...]

    # ---- (1) hoisted input projection for the whole chunk: ONE tall MXU matmul
    #      over all (t, b) rows, bias folded in. The time-major repack is a
    #      single in-VMEM transpose (no HBM transpose, no per-t masked copies).
    x_tm = jnp.transpose(x_ref[...], (1, 0, 2)).astype(jnp.bfloat16)   # [TT,BB,D]
    xw = jnp.dot(x_tm.reshape(TT * BB, D), wih_ref[...],
                 preferred_element_type=jnp.float32) + b_ref[...]
    xw_ref[...] = xw.reshape(TT, BB, G4).astype(jnp.bfloat16)

    whh = whh_ref[...]

    # ---- (2) serial recurrence: only h @ W_hh + gate nonlinearities on the
    #      critical path; BB is sized by the wrapper to fill MXU rows.
    # TODO(synk): pin W_hh in MXU weight registers across the loop
    # (pltpu.matmul_push_rhs / matmul_acc_lhs) to drop the per-step RHS reload.
    def step(t, carry):
        h, c = carry
        gates = (jnp.dot(h.astype(jnp.bfloat16), whh,
                         preferred_element_type=jnp.float32)
                 + xw_ref[t].astype(jnp.float32))                       # [BB, G4]
        i_g = jax.nn.sigmoid(gates[:, 0 * Hs:1 * Hs])
        f_g = jax.nn.sigmoid(gates[:, 1 * Hs:2 * Hs])
        g_g = jnp.tanh(gates[:, 2 * Hs:3 * Hs])
        o_g = jax.nn.sigmoid(gates[:, 3 * Hs:4 * Hs])
        c_new = f_g * c + i_g * g_g
        h_new = o_g * jnp.tanh(c_new)
        hseq_ref[t] = h_new.astype(jnp.bfloat16)   # bf16 feeds the proj matmul
        return (h_new, c_new)

    unroll = True if TT <= 32 else 8
    h_fin, c_fin = lax.fori_loop(0, TT, step, (h_sc[...], c_sc[...]),
                                 unroll=unroll)
    h_sc[...] = h_fin
    c_sc[...] = c_fin
    # Same block index across ti -> only the last chunk's value reaches HBM.
    hN_ref[...] = h_fin
    cN_ref[...] = c_fin

    # ---- (3) epilogue over the whole chunk: projection + cLN('BTD') + residual,
    #      one lane-dense [BB, TT, D] store.
    hs = hseq_ref[...].reshape(TT * BB, Hs)
    proj = jnp.dot(hs, wproj_ref[...],
                   preferred_element_type=jnp.float32) + bproj_ref[...]
    mean = jnp.mean(proj, axis=-1, keepdims=True)
    var = jnp.mean(jnp.square(proj - mean), axis=-1, keepdims=True)
    normed = gamma_ref[...] * (proj - mean) * lax.rsqrt(var + EPS) + beta_ref[...]
    out_ref[...] = x_ref[...] + jnp.transpose(normed.reshape(TT, BB, D), (1, 0, 2))


# -----------------------------------------------------------------------------
# VMEM budgeting & tile selection
# -----------------------------------------------------------------------------
def _vmem_capacity_bytes():
    try:
        info = pltpu.get_tpu_info()
        cap = getattr(info, "vmem_capacity_bytes", None)
        if cap:
            return int(cap)
    except Exception:
        pass
    return 64 * _MIB  # conservative (v7x-sized) fallback


def _vmem_estimate(BB, TT, D, Hs, G4):
    f32, bf16 = 4, 2
    io = 2 * 2 * BB * TT * D * f32                       # x + out tiles, double-buffered
    states = 2 * 4 * BB * Hs * f32                       # h0,c0,hN,cN, double-buffered
    weights = 2 * ((D * G4 + Hs * G4 + Hs * D) * bf16 + (G4 + 4 * D) * f32)
    scratch = TT * BB * (G4 + Hs) * bf16 + 2 * BB * Hs * f32
    # compiler-managed intermediates: x_tm (bf16), f32 xw before cast, proj/normed
    interm = TT * BB * (D * bf16 + G4 * f32 + 2 * D * f32)
    return io + states + weights + scratch + interm


def _tt_candidates(T, cap=128):
    cands = set()
    if T <= cap:
        cands.add(T)
    for tt in range(min(T, cap), 7, -1):
        if T % tt == 0 and tt % 8 == 0:
            cands.add(tt)
    return sorted(cands, reverse=True) or [T]


def _choose_tiles(B, T, D, Hs, G4, budget):
    tts = _tt_candidates(T)
    tt_min = tts[-1]
    bbs = sorted({min(B, c) for c in (256, 128, 64, 32, 16, 8)} | {B}, reverse=True)
    BB = None
    for bb in bbs:
        if bb < B and bb % 8 != 0:
            continue  # multi-tile batch blocks must be sublane-aligned
        if _vmem_estimate(bb, tt_min, D, Hs, G4) <= budget:
            BB = bb
            break
    if BB is None:
        BB = min(B, 8)
    # v7x has 2 TensorCores: prefer >= 2 batch tiles when B is large enough.
    if BB == B and B >= 16:
        half = _round_up(_round_up(B, 2) // 2, 8)
        if 8 <= half < B:
            BB = half
    TT = tt_min
    for tt in tts:
        if _vmem_estimate(BB, tt, D, Hs, G4) <= budget:
            TT = tt
            break
    return BB, TT


# -----------------------------------------------------------------------------
# Wrapper
# -----------------------------------------------------------------------------
def seg_lstm_forward(x, hc, params):
    """x: [B, T, D] (batch-first, like the PyTorch module). Returns (out, (h, c))."""
    x = x.astype(jnp.float32)
    B, T, D = x.shape
    H = params["w_hh"].shape[1]

    # Gate padding: per-gate 128-lane alignment only when H >= 128; otherwise
    # keep H and pad the concatenated 4H axis as a whole (avoids zero blow-up).
    Hs = _round_up(H, _LANE) if H >= _LANE else H
    G4 = _round_up(4 * Hs, _LANE)

    w_ih = params["w_ih"]                       # [4H, D] (torch nn.LSTM, gates i,f,g,o)
    w_hh = params["w_hh"]                       # [4H, H]
    bias = params["b_ih"] + params["b_hh"]      # [4H]
    w_proj = params["w_proj"]                   # [D, H]  (torch nn.Linear layout)

    def pack_gates(w):                          # [4H, X] -> [X, G4]
        X = w.shape[1]
        w4 = _pad_axis(w.reshape(4, H, X), 1, Hs)                   # [4, Hs, X]
        wp = jnp.transpose(w4, (2, 0, 1)).reshape(X, 4 * Hs)        # [X, 4*Hs]
        return _pad_axis(wp, 1, G4)

    wih_p = pack_gates(w_ih).astype(jnp.bfloat16)                   # [D, G4]
    whh_p = _pad_axis(pack_gates(w_hh), 0, Hs).astype(jnp.bfloat16)  # [Hs, G4]
    bias_p = _pad_axis(_pad_axis(bias.reshape(4, H), 1, Hs).reshape(1, 4 * Hs),
                       1, G4).astype(jnp.float32)                   # [1, G4]
    wproj_p = _pad_axis(w_proj.T, 0, Hs).astype(jnp.bfloat16)       # [Hs, D]
    bproj = params["b_proj"].reshape(1, D).astype(jnp.float32)
    gamma = params["gamma"].reshape(1, D).astype(jnp.float32)
    beta = params["beta"].reshape(1, D).astype(jnp.float32)

    if hc is None:
        h0 = jnp.zeros((B, Hs), jnp.float32)
        c0 = jnp.zeros((B, Hs), jnp.float32)
    else:
        h, c = hc                                  # [1, B, H] each
        h0 = _pad_axis(h[0].astype(jnp.float32), 1, Hs)
        c0 = _pad_axis(c[0].astype(jnp.float32), 1, Hs)

    # ---- tile selection under a generation-aware VMEM budget.
    cap = _vmem_capacity_bytes()
    budget = int(cap * 0.42)
    BB, TT = _choose_tiles(B, T, D, Hs, G4, budget)
    est = _vmem_estimate(BB, TT, D, Hs, G4)
    vmem_limit = int(min(cap * 0.85, max(2 * est, 32 * _MIB)))

    # Pad B so every grid tile is fully valid (zero rows are benign, sliced off).
    Bp = _round_up(B, BB)
    xp = _pad_axis(x, 0, Bp)
    h0 = _pad_axis(h0, 0, Bp)
    c0 = _pad_axis(c0, 0, Bp)
    nb = Bp // BB
    nt = T // TT

    # TODO(synk): weight BlockSpecs are constant across the grid; drop their
    # buffer depth (pipeline_mode=pl.Buffered(1)) once it is worth the compile risk.
    in_specs = [
        pl.BlockSpec((BB, TT, D), lambda bi, ti: (bi, ti, 0)),   # x
        pl.BlockSpec((BB, Hs), lambda bi, ti: (bi, 0)),          # h0
        pl.BlockSpec((BB, Hs), lambda bi, ti: (bi, 0)),          # c0
        pl.BlockSpec((D, G4), lambda bi, ti: (0, 0)),            # w_ih (resident)
        pl.BlockSpec((Hs, G4), lambda bi, ti: (0, 0)),           # w_hh (resident)
        pl.BlockSpec((1, G4), lambda bi, ti: (0, 0)),            # bias
        pl.BlockSpec((Hs, D), lambda bi, ti: (0, 0)),            # w_proj
        pl.BlockSpec((1, D), lambda bi, ti: (0, 0)),             # b_proj
        pl.BlockSpec((1, D), lambda bi, ti: (0, 0)),             # gamma
        pl.BlockSpec((1, D), lambda bi, ti: (0, 0)),             # beta
    ]
    out_specs = (
        pl.BlockSpec((BB, TT, D), lambda bi, ti: (bi, ti, 0)),   # out (batch-first)
        pl.BlockSpec((BB, Hs), lambda bi, ti: (bi, 0)),          # hN
        pl.BlockSpec((BB, Hs), lambda bi, ti: (bi, 0)),          # cN
    )

    out, hN, cN = pl.pallas_call(
        seg_lstm_kernel,
        out_shape=(jax.ShapeDtypeStruct((Bp, T, D), jnp.float32),
                   jax.ShapeDtypeStruct((Bp, Hs), jnp.float32),
                   jax.ShapeDtypeStruct((Bp, Hs), jnp.float32)),
        grid=(nb, nt),
        in_specs=in_specs,
        out_specs=out_specs,
        scratch_shapes=[
            pltpu.VMEM((BB, Hs), jnp.float32),        # h carry (persists over ti)
            pltpu.VMEM((BB, Hs), jnp.float32),        # c carry
            pltpu.VMEM((TT, BB, G4), jnp.bfloat16),   # hoisted gate inputs (bf16)
            pltpu.VMEM((TT, BB, Hs), jnp.bfloat16),   # hidden-state chunk
        ],
        compiler_params=pltpu.CompilerParams(
            dimension_semantics=("parallel", "arbitrary"),
            vmem_limit_bytes=vmem_limit),
    )(xp, h0, c0, wih_p, whh_p, bias_p, wproj_p, bproj, gamma, beta)

    out = out[:B]
    hN = hN[:B, :H]
    cN = cN[:B, :H]
    return out, (hN[None], cN[None])


# -----------------------------------------------------------------------------
# Parameters & pure-JAX reference (mirrors the kernel's bf16-operand math)
# -----------------------------------------------------------------------------
def init_params(key, input_size, hidden_size):
    """Deterministic synthetic parameters (torch nn.LSTM / nn.Linear / cLN layouts)."""
    D, H = input_size, hidden_size
    ks = jax.random.split(key, 6)
    s = 1.0 / jnp.sqrt(jnp.float32(H))
    return {
        "w_ih": jax.random.uniform(ks[0], (4 * H, D), jnp.float32, -s, s),
        "w_hh": jax.random.uniform(ks[1], (4 * H, H), jnp.float32, -s, s),
        "b_ih": jax.random.uniform(ks[2], (4 * H,), jnp.float32, -s, s),
        "b_hh": jax.random.uniform(ks[3], (4 * H,), jnp.float32, -s, s),
        "w_proj": jax.random.uniform(ks[4], (D, H), jnp.float32, -s, s),
        "b_proj": jax.random.uniform(ks[5], (D,), jnp.float32, -s, s),
        "gamma": jnp.ones((D,), jnp.float32),   # cLN reset_parameters
        "beta": jnp.zeros((D,), jnp.float32),
    }


def _reference_forward(x, hc, params):
    """Pure-JAX reference mirroring the kernel's bf16-operand / f32-accumulate math."""
    x = x.astype(jnp.float32)
    B, T, D = x.shape
    H = params["w_hh"].shape[1]
    if hc is None:
        h = jnp.zeros((B, H), jnp.float32)
        c = jnp.zeros((B, H), jnp.float32)
    else:
        h, c = hc[0][0].astype(jnp.float32), hc[1][0].astype(jnp.float32)

    wih_b = params["w_ih"].T.astype(jnp.bfloat16)       # [D, 4H]
    whh_b = params["w_hh"].T.astype(jnp.bfloat16)       # [H, 4H]
    wproj_b = params["w_proj"].T.astype(jnp.bfloat16)   # [H, D]
    bias = (params["b_ih"] + params["b_hh"]).astype(jnp.float32)

    # hoisted input projection (f32 accumulate, then bf16 storage), as in kernel
    xw = (jnp.dot(x.reshape(B * T, D).astype(jnp.bfloat16), wih_b,
                  preferred_element_type=jnp.float32) + bias)
    xw = xw.astype(jnp.bfloat16).reshape(B, T, 4 * H)

    def step(carry, xw_t):
        h, c = carry
        g = (jnp.dot(h.astype(jnp.bfloat16), whh_b,
                     preferred_element_type=jnp.float32)
             + xw_t.astype(jnp.float32))
        i = jax.nn.sigmoid(g[:, :H])
        f = jax.nn.sigmoid(g[:, H:2 * H])
        gg = jnp.tanh(g[:, 2 * H:3 * H])
        o = jax.nn.sigmoid(g[:, 3 * H:])
        c = f * c + i * gg
        h = o * jnp.tanh(c)
        return (h, c), h.astype(jnp.bfloat16)

    (hN, cN), hs = lax.scan(step, (h, c), jnp.transpose(xw, (1, 0, 2)))
    hs = jnp.transpose(hs, (1, 0, 2))                                 # [B, T, H] bf16
    proj = (jnp.dot(hs.reshape(B * T, H), wproj_b,
                    preferred_element_type=jnp.float32).reshape(B, T, D)
            + params["b_proj"])
    mean = jnp.mean(proj, axis=-1, keepdims=True)
    var = jnp.mean((proj - mean) ** 2, axis=-1, keepdims=True)        # biased variance
    normed = params["gamma"] * (proj - mean) / jnp.sqrt(var + EPS) + params["beta"]
    return x + normed, (hN[None], cN[None])


if __name__ == "__main__":
    B, T, D, H = 2, 8, 16, 32  # batch, seq_len, input_size, hidden_size

    key = jax.random.PRNGKey(0)
    k_x, k_p = jax.random.split(key)
    x = jax.random.normal(k_x, (B, T, D), jnp.float32)
    params = init_params(k_p, D, H)

    out, (hN, cN) = seg_lstm_forward(x, None, params)
    jax.block_until_ready((out, hN, cN))

    ref_out, (ref_h, ref_c) = _reference_forward(x, None, params)
    assert out.shape == (B, T, D) and hN.shape == (1, B, H) and cN.shape == (1, B, H)
    assert jnp.allclose(out, ref_out, rtol=5e-3, atol=5e-3), \
        float(jnp.max(jnp.abs(out - ref_out)))
    assert jnp.allclose(hN, ref_h, rtol=5e-3, atol=5e-3)
    assert jnp.allclose(cN, ref_c, rtol=5e-3, atol=5e-3)

    print("KERNEL_OK")
</pallas_src>

<mosaic_0001>
module attributes {stable_mosaic.version = 11 : i64} {
  func.func @seg_lstm_kernel(%arg0: i32, %arg1: i32, %arg2: memref<2x8x16xf32, #tpu.memory_space<vmem>>, %arg3: memref<2x32xf32, #tpu.memory_space<vmem>>, %arg4: memref<2x32xf32, #tpu.memory_space<vmem>>, %arg5: memref<16x128xbf16, #tpu.memory_space<vmem>>, %arg6: memref<32x128xbf16, #tpu.memory_space<vmem>>, %arg7: memref<1x128xf32, #tpu.memory_space<vmem>>, %arg8: memref<32x16xbf16, #tpu.memory_space<vmem>>, %arg9: memref<1x16xf32, #tpu.memory_space<vmem>>, %arg10: memref<1x16xf32, #tpu.memory_space<vmem>>, %arg11: memref<1x16xf32, #tpu.memory_space<vmem>>, %arg12: memref<2x8x16xf32, #tpu.memory_space<vmem>>, %arg13: memref<2x32xf32, #tpu.memory_space<vmem>>, %arg14: memref<2x32xf32, #tpu.memory_space<vmem>>, %arg15: memref<2x32xf32, #tpu.memory_space<vmem>>, %arg16: memref<2x32xf32, #tpu.memory_space<vmem>>, %arg17: memref<8x2x128xbf16, #tpu.memory_space<vmem>>, %arg18: memref<8x2x32xbf16, #tpu.memory_space<vmem>>) attributes {dimension_semantics = [#tpu.dimension_semantics<parallel>, #tpu.dimension_semantics<arbitrary>], iteration_bounds = array<i64: 1, 1>, scalar_prefetch = 0 : i64, scratch_operands = 4 : i64, tpu.core_type = #tpu.core_type<tc>, window_params = [{transform_indices = @transform_0, window_bounds = array<i64: 2, 8, 16>}, {transform_indices = @transform_1, window_bounds = array<i64: 2, 32>}, {transform_indices = @transform_2, window_bounds = array<i64: 2, 32>}, {pipeline_mode = #tpu.pipeline_mode<synchronous>, transform_indices = @transform_3, window_bounds = array<i64: 16, 128>}, {pipeline_mode = #tpu.pipeline_mode<synchronous>, transform_indices = @transform_4, window_bounds = array<i64: 32, 128>}, {pipeline_mode = #tpu.pipeline_mode<synchronous>, transform_indices = @transform_5, window_bounds = array<i64: 1, 128>}, {pipeline_mode = #tpu.pipeline_mode<synchronous>, transform_indices = @transform_6, window_bounds = array<i64: 32, 16>}, {pipeline_mode = #tpu.pipeline_mode<synchronous>, transform_indices = @transform_7, window_bounds = array<i64: 1, 16>}, {pipeline_mode = #tpu.pipeline_mode<synchronous>, transform_indices = @transform_8, window_bounds = array<i64: 1, 16>}, {pipeline_mode = #tpu.pipeline_mode<synchronous>, transform_indices = @transform_9, window_bounds = array<i64: 1, 16>}, {transform_indices = @transform_10, window_bounds = array<i64: 2, 8, 16>}, {transform_indices = @transform_11, window_bounds = array<i64: 2, 32>}, {transform_indices = @transform_12, window_bounds = array<i64: 2, 32>}]} {
    %c0_i32 = arith.constant 0 : i32
    %0 = arith.cmpi eq, %arg1, %c0_i32 : i32
    %1 = arith.extui %0 : i1 to i32
    %c0_i32_0 = arith.constant 0 : i32
    %2 = arith.cmpi ne, %1, %c0_i32_0 : i32
    scf.if %2 {
      %c0_112 = arith.constant 0 : index
      %c0_113 = arith.constant 0 : index
      %354 = vector.load %arg3[%c0_112, %c0_113] : memref<2x32xf32, #tpu.memory_space<vmem>>, vector<2x32xf32>
      %c0_114 = arith.constant 0 : index
      %c0_115 = arith.constant 0 : index
      %355 = vector.load %arg15[%c0_114, %c0_115] : memref<2x32xf32, #tpu.memory_space<vmem>>, vector<2x32xf32>
      tpu.vector_store %arg15[%c0_114, %c0_115], %354 {strides = array<i32>} : memref<2x32xf32, #tpu.memory_space<vmem>>, vector<2x32xf32>,
      %c0_116 = arith.constant 0 : index
      %c0_117 = arith.constant 0 : index
      %356 = vector.load %arg4[%c0_116, %c0_117] : memref<2x32xf32, #tpu.memory_space<vmem>>, vector<2x32xf32>
      %c0_118 = arith.constant 0 : index
      %c0_119 = arith.constant 0 : index
      %357 = vector.load %arg16[%c0_118, %c0_119] : memref<2x32xf32, #tpu.memory_space<vmem>>, vector<2x32xf32>
      tpu.vector_store %arg16[%c0_118, %c0_119], %356 {strides = array<i32>} : memref<2x32xf32, #tpu.memory_space<vmem>>, vector<2x32xf32>,
    } else {
    }
    %c0 = arith.constant 0 : index
    %c0_1 = arith.constant 0 : index
    %c0_2 = arith.constant 0 : index
    %3 = vector.load %arg2[%c0, %c0_1, %c0_2] : memref<2x8x16xf32, #tpu.memory_space<vmem>>, vector<2x8x16xf32>
    %4 = tpu.transpose %3, [1, 0, 2] : vector<2x8x16xf32> -> vector<8x2x16xf32>
    %5 = arith.truncf %4 : vector<8x2x16xf32> to vector<8x2x16xbf16>
    %6 = vector.shape_cast %5 : vector<8x2x16xbf16> to vector<16x16xbf16>
    %c0_3 = arith.constant 0 : index
    %c0_4 = arith.constant 0 : index
    %7 = vector.load %arg5[%c0_3, %c0_4] : memref<16x128xbf16, #tpu.memory_space<vmem>>, vector<16x128xbf16>
    %cst = arith.constant dense<0.000000e+00> : vector<16x128xf32>
    %8 = tpu.matmul %6, %7, %cst {dimension_numbers = #tpu.dot_dimension_numbers<[1], [0], [0], [1], [0, 0, 1, 1], [], []>} : vector<16x16xbf16>, vector<16x128xbf16>, vector<16x128xf32> -> vector<16x128xf32>
    %c0_5 = arith.constant 0 : index
    %c0_6 = arith.constant 0 : index
    %9 = vector.load %arg7[%c0_5, %c0_6] : memref<1x128xf32, #tpu.memory_space<vmem>>, vector<1x128xf32>
    %10 = vector.broadcast %9 : vector<1x128xf32> to vector<16x128xf32>
    %11 = arith.addf %8, %10 : vector<16x128xf32>
    %12 = vector.shape_cast %11 : vector<16x128xf32> to vector<8x2x128xf32>
    %13 = arith.truncf %12 : vector<8x2x128xf32> to vector<8x2x128xbf16>
    %c0_7 = arith.constant 0 : index
    %c0_8 = arith.constant 0 : index
    %c0_9 = arith.constant 0 : index
    %14 = vector.load %arg17[%c0_7, %c0_8, %c0_9] : memref<8x2x128xbf16, #tpu.memory_space<vmem>>, vector<8x2x128xbf16>
    tpu.vector_store %arg17[%c0_7, %c0_8, %c0_9], %13 {strides = array<i32>} : memref<8x2x128xbf16, #tpu.memory_space<vmem>>, vector<8x2x128xbf16>,
    %c0_10 = arith.constant 0 : index
    %c0_11 = arith.constant 0 : index
    %15 = vector.load %arg6[%c0_10, %c0_11] : memref<32x128xbf16, #tpu.memory_space<vmem>>, vector<32x128xbf16>
    %c0_12 = arith.constant 0 : index
    %c0_13 = arith.constant 0 : index
    %16 = vector.load %arg15[%c0_12, %c0_13] : memref<2x32xf32, #tpu.memory_space<vmem>>, vector<2x32xf32>
    %c0_14 = arith.constant 0 : index
    %c0_15 = arith.constant 0 : index
    %17 = vector.load %arg16[%c0_14, %c0_15] : memref<2x32xf32, #tpu.memory_space<vmem>>, vector<2x32xf32>
    %c0_i32_16 = arith.constant 0 : i32
    %18 = arith.truncf %16 : vector<2x32xf32> to vector<2x32xbf16>
    %cst_17 = arith.constant dense<0.000000e+00> : vector<2x128xf32>
    %19 = tpu.matmul %18, %15, %cst_17 {dimension_numbers = #tpu.dot_dimension_numbers<[1], [0], [0], [1], [0, 0, 1, 1], [], []>} : vector<2x32xbf16>, vector<32x128xbf16>, vector<2x128xf32> -> vector<2x128xf32>
    %20 = arith.index_cast %c0_i32_16 : i32 to index
    %c0_18 = arith.constant 0 : index
    %c0_19 = arith.constant 0 : index
    %21 = vector.load %arg17[%20, %c0_18, %c0_19] : memref<8x2x128xbf16, #tpu.memory_space<vmem>>, vector<1x2x128xbf16>
    %22 = vector.shape_cast %21 : vector<1x2x128xbf16> to vector<2x128xbf16>
    %23 = arith.extf %22 : vector<2x128xbf16> to vector<2x128xf32>
    %24 = arith.addf %19, %23 : vector<2x128xf32>
    %25 = vector.extract_strided_slice %24 {offsets = [0, 0], sizes = [2, 32], strides = [1, 1]} : vector<2x128xf32> to vector<2x32xf32>
    %26 = arith.negf %25 : vector<2x32xf32>
    %27 = math.exp %26 : vector<2x32xf32>
    %cst_20 = arith.constant 1.000000e+00 : f32
    %28 = vector.broadcast %cst_20 : f32 to vector<2x32xf32>
    %29 = arith.addf %28, %27 : vector<2x32xf32>
    %30 = arith.divf %28, %29 : vector<2x32xf32>
    %31 = vector.extract_strided_slice %24 {offsets = [0, 32], sizes = [2, 32], strides = [1, 1]} : vector<2x128xf32> to vector<2x32xf32>
    %32 = arith.negf %31 : vector<2x32xf32>
    %33 = math.exp %32 : vector<2x32xf32>
    %cst_21 = arith.constant 1.000000e+00 : f32
    %34 = vector.broadcast %cst_21 : f32 to vector<2x32xf32>
    %35 = arith.addf %34, %33 : vector<2x32xf32>
    %36 = arith.divf %34, %35 : vector<2x32xf32>
    %37 = vector.extract_strided_slice %24 {offsets = [0, 64], sizes = [2, 32], strides = [1, 1]} : vector<2x128xf32> to vector<2x32xf32>
    %38 = math.tanh %37 : vector<2x32xf32>
    %39 = vector.extract_strided_slice %24 {offsets = [0, 96], sizes = [2, 32], strides = [1, 1]} : vector<2x128xf32> to vector<2x32xf32>
    %40 = arith.negf %39 : vector<2x32xf32>
    %41 = math.exp %40 : vector<2x32xf32>
    %cst_22 = arith.constant 1.000000e+00 : f32
    %42 = vector.broadcast %cst_22 : f32 to vector<2x32xf32>
    %43 = arith.addf %42, %41 : vector<2x32xf32>
    %44 = arith.divf %42, %43 : vector<2x32xf32>
    %45 = arith.mulf %36, %17 : vector<2x32xf32>
    %46 = arith.mulf %30, %38 : vector<2x32xf32>
    %47 = arith.addf %45, %46 : vector<2x32xf32>
    %48 = math.tanh %47 : vector<2x32xf32>
    %49 = arith.mulf %44, %48 : vector<2x32xf32>
    %50 = arith.truncf %49 : vector<2x32xf32> to vector<2x32xbf16>
    %51 = arith.index_cast %c0_i32_16 : i32 to index
    %c0_23 = arith.constant 0 : index
    %c0_24 = arith.constant 0 : index
    %52 = vector.load %arg18[%51, %c0_23, %c0_24] : memref<8x2x32xbf16, #tpu.memory_space<vmem>>, vector<1x2x32xbf16>
    %53 = vector.shape_cast %52 : vector<1x2x32xbf16> to vector<2x32xbf16>
    %54 = vector.shape_cast %50 : vector<2x32xbf16> to vector<1x2x32xbf16>
    tpu.vector_store %arg18[%51, %c0_23, %c0_24], %54 {strides = array<i32>} : memref<8x2x32xbf16, #tpu.memory_space<vmem>>, vector<1x2x32xbf16>,
    %c1_i32 = arith.constant 1 : i32
    %55 = arith.truncf %49 : vector<2x32xf32> to vector<2x32xbf16>
    %cst_25 = arith.constant dense<0.000000e+00> : vector<2x128xf32>
    %56 = tpu.matmul %55, %15, %cst_25 {dimension_numbers = #tpu.dot_dimension_numbers<[1], [0], [0], [1], [0, 0, 1, 1], [], []>} : vector<2x32xbf16>, vector<32x128xbf16>, vector<2x128xf32> -> vector<2x128xf32>
    %57 = arith.index_cast %c1_i32 : i32 to index
    %c0_26 = arith.constant 0 : index
    %c0_27 = arith.constant 0 : index
    %58 = vector.load %arg17[%57, %c0_26, %c0_27] : memref<8x2x128xbf16, #tpu.memory_space<vmem>>, vector<1x2x128xbf16>
    %59 = vector.shape_cast %58 : vector<1x2x128xbf16> to vector<2x128xbf16>
    %60 = arith.extf %59 : vector<2x128xbf16> to vector<2x128xf32>
    %61 = arith.addf %56, %60 : vector<2x128xf32>
    %62 = vector.extract_strided_slice %61 {offsets = [0, 0], sizes = [2, 32], strides = [1, 1]} : vector<2x128xf32> to vector<2x32xf32>
    %63 = arith.negf %62 : vector<2x32xf32>
    %64 = math.exp %63 : vector<2x32xf32>
    %cst_28 = arith.constant 1.000000e+00 : f32
    %65 = vector.broadcast %cst_28 : f32 to vector<2x32xf32>
    %66 = arith.addf %65, %64 : vector<2x32xf32>
    %67 = arith.divf %65, %66 : vector<2x32xf32>
    %68 = vector.extract_strided_slice %61 {offsets = [0, 32], sizes = [2, 32], strides = [1, 1]} : vector<2x128xf32> to vector<2x32xf32>
    %69 = arith.negf %68 : vector<2x32xf32>
    %70 = math.exp %69 : vector<2x32xf32>
    %cst_29 = arith.constant 1.000000e+00 : f32
    %71 = vector.broadcast %cst_29 : f32 to vector<2x32xf32>
    %72 = arith.addf %71, %70 : vector<2x32xf32>
    %73 = arith.divf %71, %72 : vector<2x32xf32>
    %74 = vector.extract_strided_slice %61 {offsets = [0, 64], sizes = [2, 32], strides = [1, 1]} : vector<2x128xf32> to vector<2x32xf32>
    %75 = math.tanh %74 : vector<2x32xf32>
    %76 = vector.extract_strided_slice %61 {offsets = [0, 96], sizes = [2, 32], strides = [1, 1]} : vector<2x128xf32> to vector<2x32xf32>
    %77 = arith.negf %76 : vector<2x32xf32>
    %78 = math.exp %77 : vector<2x32xf32>
    %cst_30 = arith.constant 1.000000e+00 : f32
    %79 = vector.broadcast %cst_30 : f32 to vector<2x32xf32>
    %80 = arith.addf %79, %78 : vector<2x32xf32>
    %81 = arith.divf %79, %80 : vector<2x32xf32>
    %82 = arith.mulf %73, %47 : vector<2x32xf32>
    %83 = arith.mulf %67, %75 : vector<2x32xf32>
    %84 = arith.addf %82, %83 : vector<2x32xf32>
    %85 = math.tanh %84 : vector<2x32xf32>
    %86 = arith.mulf %81, %85 : vector<2x32xf32>
    %87 = arith.truncf %86 : vector<2x32xf32> to vector<2x32xbf16>
    %88 = arith.index_cast %c1_i32 : i32 to index
    %c0_31 = arith.constant 0 : index
    %c0_32 = arith.constant 0 : index
    %89 = vector.load %arg18[%88, %c0_31, %c0_32] : memref<8x2x32xbf16, #tpu.memory_space<vmem>>, vector<1x2x32xbf16>
    %90 = vector.shape_cast %89 : vector<1x2x32xbf16> to vector<2x32xbf16>
    %91 = vector.shape_cast %87 : vector<2x32xbf16> to vector<1x2x32xbf16>
    tpu.vector_store %arg18[%88, %c0_31, %c0_32], %91 {strides = array<i32>} : memref<8x2x32xbf16, #tpu.memory_space<vmem>>, vector<1x2x32xbf16>,
    %c2_i32 = arith.constant 2 : i32
    %92 = arith.truncf %86 : vector<2x32xf32> to vector<2x32xbf16>
    %cst_33 = arith.constant dense<0.000000e+00> : vector<2x128xf32>
    %93 = tpu.matmul %92, %15, %cst_33 {dimension_numbers = #tpu.dot_dimension_numbers<[1], [0], [0], [1], [0, 0, 1, 1], [], []>} : vector<2x32xbf16>, vector<32x128xbf16>, vector<2x128xf32> -> vector<2x128xf32>
    %94 = arith.index_cast %c2_i32 : i32 to index
    %c0_34 = arith.constant 0 : index
    %c0_35 = arith.constant 0 : index
    %95 = vector.load %arg17[%94, %c0_34, %c0_35] : memref<8x2x128xbf16, #tpu.memory_space<vmem>>, vector<1x2x128xbf16>
    %96 = vector.shape_cast %95 : vector<1x2x128xbf16> to vector<2x128xbf16>
    %97 = arith.extf %96 : vector<2x128xbf16> to vector<2x128xf32>
    %98 = arith.addf %93, %97 : vector<2x128xf32>
    %99 = vector.extract_strided_slice %98 {offsets = [0, 0], sizes = [2, 32], strides = [1, 1]} : vector<2x128xf32> to vector<2x32xf32>
    %100 = arith.negf %99 : vector<2x32xf32>
    %101 = math.exp %100 : vector<2x32xf32>
    %cst_36 = arith.constant 1.000000e+00 : f32
    %102 = vector.broadcast %cst_36 : f32 to vector<2x32xf32>
    %103 = arith.addf %102, %101 : vector<2x32xf32>
    %104 = arith.divf %102, %103 : vector<2x32xf32>
    %105 = vector.extract_strided_slice %98 {offsets = [0, 32], sizes = [2, 32], strides = [1, 1]} : vector<2x128xf32> to vector<2x32xf32>
    %106 = arith.negf %105 : vector<2x32xf32>
    %107 = math.exp %106 : vector<2x32xf32>
    %cst_37 = arith.constant 1.000000e+00 : f32
    %108 = vector.broadcast %cst_37 : f32 to vector<2x32xf32>
    %109 = arith.addf %108, %107 : vector<2x32xf32>
    %110 = arith.divf %108, %109 : vector<2x32xf32>
    %111 = vector.extract_strided_slice %98 {offsets = [0, 64], sizes = [2, 32], strides = [1, 1]} : vector<2x128xf32> to vector<2x32xf32>
    %112 = math.tanh %111 : vector<2x32xf32>
    %113 = vector.extract_strided_slice %98 {offsets = [0, 96], sizes = [2, 32], strides = [1, 1]} : vector<2x128xf32> to vector<2x32xf32>
    %114 = arith.negf %113 : vector<2x32xf32>
    %115 = math.exp %114 : vector<2x32xf32>
    %cst_38 = arith.constant 1.000000e+00 : f32
    %116 = vector.broadcast %cst_38 : f32 to vector<2x32xf32>
    %117 = arith.addf %116, %115 : vector<2x32xf32>
    %118 = arith.divf %116, %117 : vector<2x32xf32>
    %119 = arith.mulf %110, %84 : vector<2x32xf32>
    %120 = arith.mulf %104, %112 : vector<2x32xf32>
    %121 = arith.addf %119, %120 : vector<2x32xf32>
    %122 = math.tanh %121 : vector<2x32xf32>
    %123 = arith.mulf %118, %122 : vector<2x32xf32>
    %124 = arith.truncf %123 : vector<2x32xf32> to vector<2x32xbf16>
    %125 = arith.index_cast %c2_i32 : i32 to index
    %c0_39 = arith.constant 0 : index
    %c0_40 = arith.constant 0 : index
    %126 = vector.load %arg18[%125, %c0_39, %c0_40] : memref<8x2x32xbf16, #tpu.memory_space<vmem>>, vector<1x2x32xbf16>
    %127 = vector.shape_cast %126 : vector<1x2x32xbf16> to vector<2x32xbf16>
    %128 = vector.shape_cast %124 : vector<2x32xbf16> to vector<1x2x32xbf16>
    tpu.vector_store %arg18[%125, %c0_39, %c0_40], %128 {strides = array<i32>} : memref<8x2x32xbf16, #tpu.memory_space<vmem>>, vector<1x2x32xbf16>,
    %c3_i32 = arith.constant 3 : i32
    %129 = arith.truncf %123 : vector<2x32xf32> to vector<2x32xbf16>
    %cst_41 = arith.constant dense<0.000000e+00> : vector<2x128xf32>
    %130 = tpu.matmul %129, %15, %cst_41 {dimension_numbers = #tpu.dot_dimension_numbers<[1], [0], [0], [1], [0, 0, 1, 1], [], []>} : vector<2x32xbf16>, vector<32x128xbf16>, vector<2x128xf32> -> vector<2x128xf32>
    %131 = arith.index_cast %c3_i32 : i32 to index
    %c0_42 = arith.constant 0 : index
    %c0_43 = arith.constant 0 : index
    %132 = vector.load %arg17[%131, %c0_42, %c0_43] : memref<8x2x128xbf16, #tpu.memory_space<vmem>>, vector<1x2x128xbf16>
    %133 = vector.shape_cast %132 : vector<1x2x128xbf16> to vector<2x128xbf16>
    %134 = arith.extf %133 : vector<2x128xbf16> to vector<2x128xf32>
    %135 = arith.addf %130, %134 : vector<2x128xf32>
    %136 = vector.extract_strided_slice %135 {offsets = [0, 0], sizes = [2, 32], strides = [1, 1]} : vector<2x128xf32> to vector<2x32xf32>
    %137 = arith.negf %136 : vector<2x32xf32>
    %138 = math.exp %137 : vector<2x32xf32>
    %cst_44 = arith.constant 1.000000e+00 : f32
    %139 = vector.broadcast %cst_44 : f32 to vector<2x32xf32>
    %140 = arith.addf %139, %138 : vector<2x32xf32>
    %141 = arith.divf %139, %140 : vector<2x32xf32>
    %142 = vector.extract_strided_slice %135 {offsets = [0, 32], sizes = [2, 32], strides = [1, 1]} : vector<2x128xf32> to vector<2x32xf32>
    %143 = arith.negf %142 : vector<2x32xf32>
    %144 = math.exp %143 : vector<2x32xf32>
    %cst_45 = arith.constant 1.000000e+00 : f32
    %145 = vector.broadcast %cst_45 : f32 to vector<2x32xf32>
    %146 = arith.addf %145, %144 : vector<2x32xf32>
    %147 = arith.divf %145, %146 : vector<2x32xf32>
    %148 = vector.extract_strided_slice %135 {offsets = [0, 64], sizes = [2, 32], strides = [1, 1]} : vector<2x128xf32> to vector<2x32xf32>
    %149 = math.tanh %148 : vector<2x32xf32>
    %150 = vector.extract_strided_slice %135 {offsets = [0, 96], sizes = [2, 32], strides = [1, 1]} : vector<2x128xf32> to vector<2x32xf32>
    %151 = arith.negf %150 : vector<2x32xf32>
    %152 = math.exp %151 : vector<2x32xf32>
    %cst_46 = arith.constant 1.000000e+00 : f32
    %153 = vector.broadcast %cst_46 : f32 to vector<2x32xf32>
    %154 = arith.addf %153, %152 : vector<2x32xf32>
    %155 = arith.divf %153, %154 : vector<2x32xf32>
    %156 = arith.mulf %147, %121 : vector<2x32xf32>
    %157 = arith.mulf %141, %149 : vector<2x32xf32>
    %158 = arith.addf %156, %157 : vector<2x32xf32>
    %159 = math.tanh %158 : vector<2x32xf32>
    %160 = arith.mulf %155, %159 : vector<2x32xf32>
    %161 = arith.truncf %160 : vector<2x32xf32> to vector<2x32xbf16>
    %162 = arith.index_cast %c3_i32 : i32 to index
    %c0_47 = arith.constant 0 : index
    %c0_48 = arith.constant 0 : index
    %163 = vector.load %arg18[%162, %c0_47, %c0_48] : memref<8x2x32xbf16, #tpu.memory_space<vmem>>, vector<1x2x32xbf16>
    %164 = vector.shape_cast %163 : vector<1x2x32xbf16> to vector<2x32xbf16>
    %165 = vector.shape_cast %161 : vector<2x32xbf16> to vector<1x2x32xbf16>
    tpu.vector_store %arg18[%162, %c0_47, %c0_48], %165 {strides = array<i32>} : memref<8x2x32xbf16, #tpu.memory_space<vmem>>, vector<1x2x32xbf16>,
    %c4_i32 = arith.constant 4 : i32
    %166 = arith.truncf %160 : vector<2x32xf32> to vector<2x32xbf16>
    %cst_49 = arith.constant dense<0.000000e+00> : vector<2x128xf32>
    %167 = tpu.matmul %166, %15, %cst_49 {dimension_numbers = #tpu.dot_dimension_numbers<[1], [0], [0], [1], [0, 0, 1, 1], [], []>} : vector<2x32xbf16>, vector<32x128xbf16>, vector<2x128xf32> -> vector<2x128xf32>
    %168 = arith.index_cast %c4_i32 : i32 to index
    %c0_50 = arith.constant 0 : index
    %c0_51 = arith.constant 0 : index
    %169 = vector.load %arg17[%168, %c0_50, %c0_51] : memref<8x2x128xbf16, #tpu.memory_space<vmem>>, vector<1x2x128xbf16>
    %170 = vector.shape_cast %169 : vector<1x2x128xbf16> to vector<2x128xbf16>
    %171 = arith.extf %170 : vector<2x128xbf16> to vector<2x128xf32>
    %172 = arith.addf %167, %171 : vector<2x128xf32>
    %173 = vector.extract_strided_slice %172 {offsets = [0, 0], sizes = [2, 32], strides = [1, 1]} : vector<2x128xf32> to vector<2x32xf32>
    %174 = arith.negf %173 : vector<2x32xf32>
    %175 = math.exp %174 : vector<2x32xf32>
    %cst_52 = arith.constant 1.000000e+00 : f32
    %176 = vector.broadcast %cst_52 : f32 to vector<2x32xf32>
    %177 = arith.addf %176, %175 : vector<2x32xf32>
    %178 = arith.divf %176, %177 : vector<2x32xf32>
    %179 = vector.extract_strided_slice %172 {offsets = [0, 32], sizes = [2, 32], strides = [1, 1]} : vector<2x128xf32> to vector<2x32xf32>
    %180 = arith.negf %179 : vector<2x32xf32>
    %181 = math.exp %180 : vector<2x32xf32>
    %cst_53 = arith.constant 1.000000e+00 : f32
    %182 = vector.broadcast %cst_53 : f32 to vector<2x32xf32>
    %183 = arith.addf %182, %181 : vector<2x32xf32>
    %184 = arith.divf %182, %183 : vector<2x32xf32>
    %185 = vector.extract_strided_slice %172 {offsets = [0, 64], sizes = [2, 32], strides = [1, 1]} : vector<2x128xf32> to vector<2x32xf32>
    %186 = math.tanh %185 : vector<2x32xf32>
    %187 = vector.extract_strided_slice %172 {offsets = [0, 96], sizes = [2, 32], strides = [1, 1]} : vector<2x128xf32> to vector<2x32xf32>
    %188 = arith.negf %187 : vector<2x32xf32>
    %189 = math.exp %188 : vector<2x32xf32>
    %cst_54 = arith.constant 1.000000e+00 : f32
    %190 = vector.broadcast %cst_54 : f32 to vector<2x32xf32>
    %191 = arith.addf %190, %189 : vector<2x32xf32>
    %192 = arith.divf %190, %191 : vector<2x32xf32>
    %193 = arith.mulf %184, %158 : vector<2x32xf32>
    %194 = arith.mulf %178, %186 : vector<2x32xf32>
    %195 = arith.addf %193, %194 : vector<2x32xf32>
    %196 = math.tanh %195 : vector<2x32xf32>
    %197 = arith.mulf %192, %196 : vector<2x32xf32>
    %198 = arith.truncf %197 : vector<2x32xf32> to vector<2x32xbf16>
    %199 = arith.index_cast %c4_i32 : i32 to index
    %c0_55 = arith.constant 0 : index
    %c0_56 = arith.constant 0 : index
    %200 = vector.load %arg18[%199, %c0_55, %c0_56] : memref<8x2x32xbf16, #tpu.memory_space<vmem>>, vector<1x2x32xbf16>
    %201 = vector.shape_cast %200 : vector<1x2x32xbf16> to vector<2x32xbf16>
    %202 = vector.shape_cast %198 : vector<2x32xbf16> to vector<1x2x32xbf16>
    tpu.vector_store %arg18[%199, %c0_55, %c0_56], %202 {strides = array<i32>} : memref<8x2x32xbf16, #tpu.memory_space<vmem>>, vector<1x2x32xbf16>,
    %c5_i32 = arith.constant 5 : i32
    %203 = arith.truncf %197 : vector<2x32xf32> to vector<2x32xbf16>
    %cst_57 = arith.constant dense<0.000000e+00> : vector<2x128xf32>
    %204 = tpu.matmul %203, %15, %cst_57 {dimension_numbers = #tpu.dot_dimension_numbers<[1], [0], [0], [1], [0, 0, 1, 1], [], []>} : vector<2x32xbf16>, vector<32x128xbf16>, vector<2x128xf32> -> vector<2x128xf32>
    %205 = arith.index_cast %c5_i32 : i32 to index
    %c0_58 = arith.constant 0 : index
    %c0_59 = arith.constant 0 : index
    %206 = vector.load %arg17[%205, %c0_58, %c0_59] : memref<8x2x128xbf16, #tpu.memory_space<vmem>>, vector<1x2x128xbf16>
    %207 = vector.shape_cast %206 : vector<1x2x128xbf16> to vector<2x128xbf16>
    %208 = arith.extf %207 : vector<2x128xbf16> to vector<2x128xf32>
    %209 = arith.addf %204, %208 : vector<2x128xf32>
    %210 = vector.extract_strided_slice %209 {offsets = [0, 0], sizes = [2, 32], strides = [1, 1]} : vector<2x128xf32> to vector<2x32xf32>
    %211 = arith.negf %210 : vector<2x32xf32>
    %212 = math.exp %211 : vector<2x32xf32>
    %cst_60 = arith.constant 1.000000e+00 : f32
    %213 = vector.broadcast %cst_60 : f32 to vector<2x32xf32>
    %214 = arith.addf %213, %212 : vector<2x32xf32>
    %215 = arith.divf %213, %214 : vector<2x32xf32>
    %216 = vector.extract_strided_slice %209 {offsets = [0, 32], sizes = [2, 32], strides = [1, 1]} : vector<2x128xf32> to vector<2x32xf32>
    %217 = arith.negf %216 : vector<2x32xf32>
    %218 = math.exp %217 : vector<2x32xf32>
    %cst_61 = arith.constant 1.000000e+00 : f32
    %219 = vector.broadcast %cst_61 : f32 to vector<2x32xf32>
    %220 = arith.addf %219, %218 : vector<2x32xf32>
    %221 = arith.divf %219, %220 : vector<2x32xf32>
    %222 = vector.extract_strided_slice %209 {offsets = [0, 64], sizes = [2, 32], strides = [1, 1]} : vector<2x128xf32> to vector<2x32xf32>
    %223 = math.tanh %222 : vector<2x32xf32>
    %224 = vector.extract_strided_slice %209 {offsets = [0, 96], sizes = [2, 32], strides = [1, 1]} : vector<2x128xf32> to vector<2x32xf32>
    %225 = arith.negf %224 : vector<2x32xf32>
    %226 = math.exp %225 : vector<2x32xf32>
    %cst_62 = arith.constant 1.000000e+00 : f32
    %227 = vector.broadcast %cst_62 : f32 to vector<2x32xf32>
    %228 = arith.addf %227, %226 : vector<2x32xf32>
    %229 = arith.divf %227, %228 : vector<2x32xf32>
    %230 = arith.mulf %221, %195 : vector<2x32xf32>
    %231 = arith.mulf %215, %223 : vector<2x32xf32>
    %232 = arith.addf %230, %231 : vector<2x32xf32>
    %233 = math.tanh %232 : vector<2x32xf32>
    %234 = arith.mulf %229, %233 : vector<2x32xf32>
    %235 = arith.truncf %234 : vector<2x32xf32> to vector<2x32xbf16>
    %236 = arith.index_cast %c5_i32 : i32 to index
    %c0_63 = arith.constant 0 : index
    %c0_64 = arith.constant 0 : index
    %237 = vector.load %arg18[%236, %c0_63, %c0_64] : memref<8x2x32xbf16, #tpu.memory_space<vmem>>, vector<1x2x32xbf16>
    %238 = vector.shape_cast %237 : vector<1x2x32xbf16> to vector<2x32xbf16>
    %239 = vector.shape_cast %235 : vector<2x32xbf16> to vector<1x2x32xbf16>
    tpu.vector_store %arg18[%236, %c0_63, %c0_64], %239 {strides = array<i32>} : memref<8x2x32xbf16, #tpu.memory_space<vmem>>, vector<1x2x32xbf16>,
    %c6_i32 = arith.constant 6 : i32
    %240 = arith.truncf %234 : vector<2x32xf32> to vector<2x32xbf16>
    %cst_65 = arith.constant dense<0.000000e+00> : vector<2x128xf32>
    %241 = tpu.matmul %240, %15, %cst_65 {dimension_numbers = #tpu.dot_dimension_numbers<[1], [0], [0], [1], [0, 0, 1, 1], [], []>} : vector<2x32xbf16>, vector<32x128xbf16>, vector<2x128xf32> -> vector<2x128xf32>
    %242 = arith.index_cast %c6_i32 : i32 to index
    %c0_66 = arith.constant 0 : index
    %c0_67 = arith.constant 0 : index
    %243 = vector.load %arg17[%242, %c0_66, %c0_67] : memref<8x2x128xbf16, #tpu.memory_space<vmem>>, vector<1x2x128xbf16>
    %244 = vector.shape_cast %243 : vector<1x2x128xbf16> to vector<2x128xbf16>
    %245 = arith.extf %244 : vector<2x128xbf16> to vector<2x128xf32>
    %246 = arith.addf %241, %245 : vector<2x128xf32>
    %247 = vector.extract_strided_slice %246 {offsets = [0, 0], sizes = [2, 32], strides = [1, 1]} : vector<2x128xf32> to vector<2x32xf32>
    %248 = arith.negf %247 : vector<2x32xf32>
    %249 = math.exp %248 : vector<2x32xf32>
    %cst_68 = arith.constant 1.000000e+00 : f32
    %250 = vector.broadcast %cst_68 : f32 to vector<2x32xf32>
    %251 = arith.addf %250, %249 : vector<2x32xf32>
    %252 = arith.divf %250, %251 : vector<2x32xf32>
    %253 = vector.extract_strided_slice %246 {offsets = [0, 32], sizes = [2, 32], strides = [1, 1]} : vector<2x128xf32> to vector<2x32xf32>
    %254 = arith.negf %253 : vector<2x32xf32>
    %255 = math.exp %254 : vector<2x32xf32>
    %cst_69 = arith.constant 1.000000e+00 : f32
    %256 = vector.broadcast %cst_69 : f32 to vector<2x32xf32>
    %257 = arith.addf %256, %255 : vector<2x32xf32>
    %258 = arith.divf %256, %257 : vector<2x32xf32>
    %259 = vector.extract_strided_slice %246 {offsets = [0, 64], sizes = [2, 32], strides = [1, 1]} : vector<2x128xf32> to vector<2x32xf32>
    %260 = math.tanh %259 : vector<2x32xf32>
    %261 = vector.extract_strided_slice %246 {offsets = [0, 96], sizes = [2, 32], strides = [1, 1]} : vector<2x128xf32> to vector<2x32xf32>
    %262 = arith.negf %261 : vector<2x32xf32>
    %263 = math.exp %262 : vector<2x32xf32>
    %cst_70 = arith.constant 1.000000e+00 : f32
    %264 = vector.broadcast %cst_70 : f32 to vector<2x32xf32>
    %265 = arith.addf %264, %263 : vector<2x32xf32>
    %266 = arith.divf %264, %265 : vector<2x32xf32>
    %267 = arith.mulf %258, %232 : vector<2x32xf32>
    %268 = arith.mulf %252, %260 : vector<2x32xf32>
    %269 = arith.addf %267, %268 : vector<2x32xf32>
    %270 = math.tanh %269 : vector<2x32xf32>
    %271 = arith.mulf %266, %270 : vector<2x32xf32>
    %272 = arith.truncf %271 : vector<2x32xf32> to vector<2x32xbf16>
    %273 = arith.index_cast %c6_i32 : i32 to index
    %c0_71 = arith.constant 0 : index
    %c0_72 = arith.constant 0 : index
    %274 = vector.load %arg18[%273, %c0_71, %c0_72] : memref<8x2x32xbf16, #tpu.memory_space<vmem>>, vector<1x2x32xbf16>
    %275 = vector.shape_cast %274 : vector<1x2x32xbf16> to vector<2x32xbf16>
    %276 = vector.shape_cast %272 : vector<2x32xbf16> to vector<1x2x32xbf16>
    tpu.vector_store %arg18[%273, %c0_71, %c0_72], %276 {strides = array<i32>} : memref<8x2x32xbf16, #tpu.memory_space<vmem>>, vector<1x2x32xbf16>,
    %c7_i32 = arith.constant 7 : i32
    %277 = arith.truncf %271 : vector<2x32xf32> to vector<2x32xbf16>
    %cst_73 = arith.constant dense<0.000000e+00> : vector<2x128xf32>
    %278 = tpu.matmul %277, %15, %cst_73 {dimension_numbers = #tpu.dot_dimension_numbers<[1], [0], [0], [1], [0, 0, 1, 1], [], []>} : vector<2x32xbf16>, vector<32x128xbf16>, vector<2x128xf32> -> vector<2x128xf32>
    %279 = arith.index_cast %c7_i32 : i32 to index
    %c0_74 = arith.constant 0 : index
    %c0_75 = arith.constant 0 : index
    %280 = vector.load %arg17[%279, %c0_74, %c0_75] : memref<8x2x128xbf16, #tpu.memory_space<vmem>>, vector<1x2x128xbf16>
    %281 = vector.shape_cast %280 : vector<1x2x128xbf16> to vector<2x128xbf16>
    %282 = arith.extf %281 : vector<2x128xbf16> to vector<2x128xf32>
    %283 = arith.addf %278, %282 : vector<2x128xf32>
    %284 = vector.extract_strided_slice %283 {offsets = [0, 0], sizes = [2, 32], strides = [1, 1]} : vector<2x128xf32> to vector<2x32xf32>
    %285 = arith.negf %284 : vector<2x32xf32>
    %286 = math.exp %285 : vector<2x32xf32>
    %cst_76 = arith.constant 1.000000e+00 : f32
    %287 = vector.broadcast %cst_76 : f32 to vector<2x32xf32>
    %288 = arith.addf %287, %286 : vector<2x32xf32>
    %289 = arith.divf %287, %288 : vector<2x32xf32>
    %290 = vector.extract_strided_slice %283 {offsets = [0, 32], sizes = [2, 32], strides = [1, 1]} : vector<2x128xf32> to vector<2x32xf32>
    %291 = arith.negf %290 : vector<2x32xf32>
    %292 = math.exp %291 : vector<2x32xf32>
    %cst_77 = arith.constant 1.000000e+00 : f32
    %293 = vector.broadcast %cst_77 : f32 to vector<2x32xf32>
    %294 = arith.addf %293, %292 : vector<2x32xf32>
    %295 = arith.divf %293, %294 : vector<2x32xf32>
    %296 = vector.extract_strided_slice %283 {offsets = [0, 64], sizes = [2, 32], strides = [1, 1]} : vector<2x128xf32> to vector<2x32xf32>
    %297 = math.tanh %296 : vector<2x32xf32>
    %298 = vector.extract_strided_slice %283 {offsets = [0, 96], sizes = [2, 32], strides = [1, 1]} : vector<2x128xf32> to vector<2x32xf32>
    %299 = arith.negf %298 : vector<2x32xf32>
    %300 = math.exp %299 : vector<2x32xf32>
    %cst_78 = arith.constant 1.000000e+00 : f32
    %301 = vector.broadcast %cst_78 : f32 to vector<2x32xf32>
    %302 = arith.addf %301, %300 : vector<2x32xf32>
    %303 = arith.divf %301, %302 : vector<2x32xf32>
    %304 = arith.mulf %295, %269 : vector<2x32xf32>
    %305 = arith.mulf %289, %297 : vector<2x32xf32>
    %306 = arith.addf %304, %305 : vector<2x32xf32>
    %307 = math.tanh %306 : vector<2x32xf32>
    %308 = arith.mulf %303, %307 : vector<2x32xf32>
    %309 = arith.truncf %308 : vector<2x32xf32> to vector<2x32xbf16>
    %310 = arith.index_cast %c7_i32 : i32 to index
    %c0_79 = arith.constant 0 : index
    %c0_80 = arith.constant 0 : index
    %311 = vector.load %arg18[%310, %c0_79, %c0_80] : memref<8x2x32xbf16, #tpu.memory_space<vmem>>, vector<1x2x32xbf16>
    %312 = vector.shape_cast %311 : vector<1x2x32xbf16> to vector<2x32xbf16>
    %313 = vector.shape_cast %309 : vector<2x32xbf16> to vector<1x2x32xbf16>
    tpu.vector_store %arg18[%310, %c0_79, %c0_80], %313 {strides = array<i32>} : memref<8x2x32xbf16, #tpu.memory_space<vmem>>, vector<1x2x32xbf16>,
    %c8_i32 = arith.constant 8 : i32
    %c0_81 = arith.constant 0 : index
    %c0_82 = arith.constant 0 : index
    %314 = vector.load %arg15[%c0_81, %c0_82] : memref<2x32xf32, #tpu.memory_space<vmem>>, vector<2x32xf32>
    tpu.vector_store %arg15[%c0_81, %c0_82], %308 {strides = array<i32>} : memref<2x32xf32, #tpu.memory_space<vmem>>, vector<2x32xf32>,
    %c0_83 = arith.constant 0 : index
    %c0_84 = arith.constant 0 : index
    %315 = vector.load %arg16[%c0_83, %c0_84] : memref<2x32xf32, #tpu.memory_space<vmem>>, vector<2x32xf32>
    tpu.vector_store %arg16[%c0_83, %c0_84], %306 {strides = array<i32>} : memref<2x32xf32, #tpu.memory_space<vmem>>, vector<2x32xf32>,
    %c0_85 = arith.constant 0 : index
    %c0_86 = arith.constant 0 : index
    %316 = vector.load %arg13[%c0_85, %c0_86] : memref<2x32xf32, #tpu.memory_space<vmem>>, vector<2x32xf32>
    tpu.vector_store %arg13[%c0_85, %c0_86], %308 {strides = array<i32>} : memref<2x32xf32, #tpu.memory_space<vmem>>, vector<2x32xf32>,
    %c0_87 = arith.constant 0 : index
    %c0_88 = arith.constant 0 : index
    %317 = vector.load %arg14[%c0_87, %c0_88] : memref<2x32xf32, #tpu.memory_space<vmem>>, vector<2x32xf32>
    tpu.vector_store %arg14[%c0_87, %c0_88], %306 {strides = array<i32>} : memref<2x32xf32, #tpu.memory_space<vmem>>, vector<2x32xf32>,
    %c0_89 = arith.constant 0 : index
    %c0_90 = arith.constant 0 : index
    %c0_91 = arith.constant 0 : index
    %318 = vector.load %arg18[%c0_89, %c0_90, %c0_91] : memref<8x2x32xbf16, #tpu.memory_space<vmem>>, vector<8x2x32xbf16>
    %319 = vector.shape_cast %318 : vector<8x2x32xbf16> to vector<16x32xbf16>
    %c0_92 = arith.constant 0 : index
    %c0_93 = arith.constant 0 : index
    %320 = vector.load %arg8[%c0_92, %c0_93] : memref<32x16xbf16, #tpu.memory_space<vmem>>, vector<32x16xbf16>
    %cst_94 = arith.constant dense<0.000000e+00> : vector<16x16xf32>
    %321 = tpu.matmul %319, %320, %cst_94 {dimension_numbers = #tpu.dot_dimension_numbers<[1], [0], [0], [1], [0, 0, 1, 1], [], []>} : vector<16x32xbf16>, vector<32x16xbf16>, vector<16x16xf32> -> vector<16x16xf32>
    %c0_95 = arith.constant 0 : index
    %c0_96 = arith.constant 0 : index
    %322 = vector.load %arg9[%c0_95, %c0_96] : memref<1x16xf32, #tpu.memory_space<vmem>>, vector<1x16xf32>
    %323 = vector.broadcast %322 : vector<1x16xf32> to vector<16x16xf32>
    %324 = arith.addf %321, %323 : vector<16x16xf32>
    %cst_97 = arith.constant dense<0.000000e+00> : vector<16xf32>
    %325 = vector.multi_reduction <add>, %324, %cst_97 [1] : vector<16x16xf32> to vector<16xf32>
    %326 = vector.shape_cast %325 : vector<16xf32> to vector<16x1xf32>
    %cst_98 = arith.constant 1.600000e+01 : f32
    %327 = vector.broadcast %cst_98 : f32 to vector<16x1xf32>
    %328 = arith.divf %326, %327 : vector<16x1xf32>
    %329 = vector.broadcast %328 : vector<16x1xf32> to vector<16x16xf32>
    %330 = arith.subf %324, %329 : vector<16x16xf32>
    %331 = arith.mulf %330, %330 : vector<16x16xf32>
    %cst_99 = arith.constant dense<0.000000e+00> : vector<16xf32>
    %332 = vector.multi_reduction <add>, %331, %cst_99 [1] : vector<16x16xf32> to vector<16xf32>
    %333 = vector.shape_cast %332 : vector<16xf32> to vector<16x1xf32>
    %cst_100 = arith.constant 1.600000e+01 : f32
    %334 = vector.broadcast %cst_100 : f32 to vector<16x1xf32>
    %335 = arith.divf %333, %334 : vector<16x1xf32>
    %c0_101 = arith.constant 0 : index
    %c0_102 = arith.constant 0 : index
    %336 = vector.load %arg10[%c0_101, %c0_102] : memref<1x16xf32, #tpu.memory_space<vmem>>, vector<1x16xf32>
    %337 = vector.broadcast %328 : vector<16x1xf32> to vector<16x16xf32>
    %338 = arith.subf %324, %337 : vector<16x16xf32>
    %339 = vector.broadcast %336 : vector<1x16xf32> to vector<16x16xf32>
    %340 = arith.mulf %339, %338 : vector<16x16xf32>
    %cst_103 = arith.constant 1.1920929E-7 : f32
    %341 = vector.broadcast %cst_103 : f32 to vector<16x1xf32>
    %342 = arith.addf %335, %341 : vector<16x1xf32>
    %343 = math.rsqrt %342 : vector<16x1xf32>
    %344 = vector.broadcast %343 : vector<16x1xf32> to vector<16x16xf32>
    %345 = arith.mulf %340, %344 : vector<16x16xf32>
    %c0_104 = arith.constant 0 : index
    %c0_105 = arith.constant 0 : index
    %346 = vector.load %arg11[%c0_104, %c0_105] : memref<1x16xf32, #tpu.memory_space<vmem>>, vector<1x16xf32>
    %347 = vector.broadcast %346 : vector<1x16xf32> to vector<16x16xf32>
    %348 = arith.addf %345, %347 : vector<16x16xf32>
    %c0_106 = arith.constant 0 : index
    %c0_107 = arith.constant 0 : index
    %c0_108 = arith.constant 0 : index
    %349 = vector.load %arg2[%c0_106, %c0_107, %c0_108] : memref<2x8x16xf32, #tpu.memory_space<vmem>>, vector<2x8x16xf32>
    %350 = vector.shape_cast %348 : vector<16x16xf32> to vector<8x2x16xf32>
    %351 = tpu.transpose %350, [1, 0, 2] : vector<8x2x16xf32> -> vector<2x8x16xf32>
    %352 = arith.addf %349, %351 : vector<2x8x16xf32>
    %c0_109 = arith.constant 0 : index
    %c0_110 = arith.constant 0 : index
    %c0_111 = arith.constant 0 : index
    %353 = vector.load %arg12[%c0_109, %c0_110, %c0_111] : memref<2x8x16xf32, #tpu.memory_space<vmem>>, vector<2x8x16xf32>
    tpu.vector_store %arg12[%c0_109, %c0_110, %c0_111], %352 {strides = array<i32>} : memref<2x8x16xf32, #tpu.memory_space<vmem>>, vector<2x8x16xf32>,
    return
  }
  func.func @transform_0(%arg0: i32, %arg1: i32) -> (i32, i32, i32) {
    %c0_i32 = arith.constant 0 : i32
    %c0_i32_0 = arith.constant 0 : i32
    return %arg0, %arg1, %c0_i32 : i32, i32, i32
  }
  func.func @transform_1(%arg0: i32, %arg1: i32) -> (i32, i32) {
    %c0_i32 = arith.constant 0 : i32
    %c0_i32_0 = arith.constant 0 : i32
    return %arg0, %c0_i32 : i32, i32
  }
  func.func @transform_2(%arg0: i32, %arg1: i32) -> (i32, i32) {
    %c0_i32 = arith.constant 0 : i32
    %c0_i32_0 = arith.constant 0 : i32
    return %arg0, %c0_i32 : i32, i32
  }
  func.func @transform_3(%arg0: i32, %arg1: i32) -> (i32, i32) {
    %c0_i32 = arith.constant 0 : i32
    %c0_i32_0 = arith.constant 0 : i32
    %c0_i32_1 = arith.constant 0 : i32
    return %c0_i32, %c0_i32_0 : i32, i32
  }
  func.func @transform_4(%arg0: i32, %arg1: i32) -> (i32, i32) {
    %c0_i32 = arith.constant 0 : i32
    %c0_i32_0 = arith.constant 0 : i32
    %c0_i32_1 = arith.constant 0 : i32
    return %c0_i32, %c0_i32_0 : i32, i32
  }
  func.func @transform_5(%arg0: i32, %arg1: i32) -> (i32, i32) {
    %c0_i32 = arith.constant 0 : i32
    %c0_i32_0 = arith.constant 0 : i32
    %c0_i32_1 = arith.constant 0 : i32
    return %c0_i32, %c0_i32_0 : i32, i32
  }
  func.func @transform_6(%arg0: i32, %arg1: i32) -> (i32, i32) {
    %c0_i32 = arith.constant 0 : i32
    %c0_i32_0 = arith.constant 0 : i32
    %c0_i32_1 = arith.constant 0 : i32
    return %c0_i32, %c0_i32_0 : i32, i32
  }
  func.func @transform_7(%arg0: i32, %arg1: i32) -> (i32, i32) {
    %c0_i32 = arith.constant 0 : i32
    %c0_i32_0 = arith.constant 0 : i32
    %c0_i32_1 = arith.constant 0 : i32
    return %c0_i32, %c0_i32_0 : i32, i32
  }
  func.func @transform_8(%arg0: i32, %arg1: i32) -> (i32, i32) {
    %c0_i32 = arith.constant 0 : i32
    %c0_i32_0 = arith.constant 0 : i32
    %c0_i32_1 = arith.constant 0 : i32
    return %c0_i32, %c0_i32_0 : i32, i32
  }
  func.func @transform_9(%arg0: i32, %arg1: i32) -> (i32, i32) {
    %c0_i32 = arith.constant 0 : i32
    %c0_i32_0 = arith.constant 0 : i32
    %c0_i32_1 = arith.constant 0 : i32
    return %c0_i32, %c0_i32_0 : i32, i32
  }
  func.func @transform_10(%arg0: i32, %arg1: i32) -> (i32, i32, i32) {
    %c0_i32 = arith.constant 0 : i32
    %c0_i32_0 = arith.constant 0 : i32
    return %arg0, %arg1, %c0_i32 : i32, i32, i32
  }
  func.func @transform_11(%arg0: i32, %arg1: i32) -> (i32, i32) {
    %c0_i32 = arith.constant 0 : i32
    %c0_i32_0 = arith.constant 0 : i32
    return %arg0, %c0_i32 : i32, i32
  }
  func.func @transform_12(%arg0: i32, %arg1: i32) -> (i32, i32) {
    %c0_i32 = arith.constant 0 : i32
    %c0_i32_0 = arith.constant 0 : i32
    return %arg0, %c0_i32 : i32, i32
  }
}

</mosaic_0001>

<bundles_post_ra>
// kernel: tpu_custom_call.1
= control target key start
LH: loop header
LB: loop body
LE: loop exit
PB: predicated region body
PF: predicated region fallthrough
CT: control target
= control target key end

     0   :  { %18 = vsyncpa [#allocation7], 0  ;;  %s2187_s0 = inlined_call_operand.vmem [shape: f32[2,8,16], index: 0, kind: input, shape index: {}]   ;;  %s2188_s1 = inlined_call_operand.hbm [shape: f32[2,32], index: 1, kind: input, shape index: {}]   ;;  %s2189_s2 = inlined_call_operand.vmem [shape: f32[2,32], index: 2, kind: input, shape index: {}]   ;;  %s2190_s3 = inlined_call_operand.vmem [shape: bf16[16,128], index: 3, kind: input, shape index: {}]   ;;  %s2191_s4 = inlined_call_operand.hbm [shape: bf16[32,128], index: 4, kind: input, shape index: {}]   ;;  %s2192_s5 = inlined_call_operand.hbm [shape: f32[1,128], index: 5, kind: input, shape index: {}]   ;;  %s2193_s6 = inlined_call_operand.vmem [shape: bf16[32,16], index: 6, kind: input, shape index: {}]   ;;  %s2194_s7 = inlined_call_operand.vmem [shape: f32[1,16], index: 7, kind: input, shape index: {}]   ;;  %s2195_s8 = inlined_call_operand.vmem [shape: f32[1,16], index: 8, kind: input, shape index: {}]   ;;  %s2196_s9 = inlined_call_operand.vmem [shape: f32[1,16], index: 9, kind: input, shape index: {}]   ;;  %s2197_s10 = inlined_call_operand.hbm [shape: f32[2,8,16], index: 10, kind: output, shape index: {0}]   ;;  %s2198_s11 = inlined_call_operand.hbm [shape: f32[2,32], index: 11, kind: output, shape index: {1}]   ;;  %s2199_s12 = inlined_call_operand.hbm [shape: f32[2,32], index: 12, kind: output, shape index: {2}]  }
   0x1   :  { %19 = vsyncpa [#allocation10], 0 }
   0x2   :  { %20 = vsyncpa [#allocation8], 0 }
   0x3   :  { %21 = vsyncpa [#allocation14], 0  ;;  %s1830_s21 = smov [#allocation9]  }
   0x4   :  { %s43_s22 = sshll.u32 %s1830_s21, 4  ;;  %s44_s22 = int_to_ptr.vmem [resolvable:$true] %s43_s22 }
   0x5   :  { %s1710_s23 = scalar_lea.vmem %s44_s22, 256  ;;  %p1715_p1 = scmp.lt.s32.totalorder %s44_s22, %s44_s22 }
   0x6   :  { %p1711_p0 = scmp.ne.s32.totalorder %s44_s22, %s1710_s23  ;;  %p1716_p2 = scmp.lt.s32.totalorder %s1710_s23, %s1710_s23 }
   0x8   :  { %p1717_p3 = por %p1716_p2, %p1715_p1 }
   0xa   :  { %p1718_p4 = pnand %p1717_p3, %p1711_p0 }
   0xc   :  { %1721 = shalt.err (!%p1718_p4)
}
   0xd   :  { %s1831_s24 = smov 64   ;;  %s1832_s25 = smov 4  }
   0xe   :  { %49 = dma.hbm_to_vmem [thread:$0]  %s2191_s4, 256, %s44_s22, [#allocation10], %s1831_s24, %s1831_s24, %s1832_s25  }
   0xf   :  { %s1833_s28 = smov [#allocation6]   ;;  %s1834_s30 = smov [#allocation11]  }
  0x10   :  { %s30_s29 = sshll.u32 %s1833_s28, 4  ;;  %s56_s13 = sshll.u32 %s1834_s30, 4  ;;  %s31_s29 = int_to_ptr.vmem [resolvable:$true] %s30_s29  ;;  %s57_s13 = int_to_ptr.vmem [resolvable:$true] %s56_s13 }
  0x11   :  { %s1730_s14 = scalar_lea.vmem %s31_s29, 32  ;;  %p1735_p6 = scmp.lt.s32.totalorder %s31_s29, %s31_s29 }
  0x12   :  { %p1731_p5 = scmp.ne.s32.totalorder %s31_s29, %s1730_s14  ;;  %p1736_p7 = scmp.lt.s32.totalorder %s1730_s14, %s1730_s14 }
  0x14   :  { %p1737_p8 = por %p1736_p7, %p1735_p6 }
  0x16   :  { %p1738_p9 = pnand %p1737_p8, %p1731_p5 }
  0x18   :  { %1741 = shalt.err (!%p1738_p9)
}
  0x19   :  { %33 = dma.hbm_to_vmem [thread:$0]  %s2188_s1, 32, %s31_s29, [#allocation7]  }
  0x1a   :  { %s1750_s17 = scalar_lea.vmem %s57_s13, 16  ;;  %s1754_s4 = scalar_lea.vmem %s57_s13, 32 }
  0x1b   :  { %p1751_p10 = scmp.ne.s32.totalorder %s57_s13, %s1750_s17  ;;  %p1755_p11 = scmp.lt.s32.totalorder %s57_s13, %s57_s13 }
  0x1c   :  { %p1756_p12 = scmp.lt.s32.totalorder %s1754_s4, %s1750_s17 }
  0x1e   :  { %p1757_p13 = por %p1756_p12, %p1755_p11 }
  0x20   :  { %p1758_p0 = pnand %p1757_p13, %p1751_p10 }
  0x22   :  { %1761 = shalt.err (!%p1758_p0)
}
  0x23   :  { %59 = dma.hbm_to_vmem [thread:$0]  %s2192_s5, 16, %s57_s13, [#allocation10]  }
  0x24   :  { %1822 = dma.done.wait [#allocation7], 32  }
  0x25   :  { %1823 = vsyncadd [#allocation7], 4294967264 }
  0x26   :  { %1824 = dma.done.wait [#allocation10], 272  }
  0x27   :  { %1825 = vsyncadd [#allocation10], 4294967024  ;;  %v93_v0 = vlaneseq  ;;  %v1835_v1 = vmov 0.0   ;;  %vm1836_vm0 = vmmov 0   ;;  %v1837_v2 = vmov 1983009808  }
  0x28   :  { %1532 = vmatprep.subr.bf16.mxu0 %v1835_v1  ;;  %1534 = vmatprep.mubr.msk.bf16.mxu0 %vm1836_vm0, %v1835_v1  ;;  %v91_v3 = vunpack.c.l.s4 %v1837_v2  ;;  %v1838_v5 = vmov 1934713408   ;;  %v1839_v10 = vmov 1966171168   ;;  %v1627_v12 = vld [vmem:[%s2190_s3] sm:$0xff]   ;;  %v88_v14 = vld [vmem:[%s2187_s0 + $0x8] sm:$0xff] }
  0x29   :  { %v94_v4 = vshrl.u32 %v93_v0, 7  ;;  %v122_v6 = vunpack.c.l.s4 %v1838_v5  ;;  %1538 = vmatprep.subr.bf16.mxu1 %v1835_v1  ;;  %1542 = vmatprep.mubr.msk.bf16.mxu1 %vm1836_vm0, %v1835_v1  ;;  %v185_v11 = vunpack.c.l.s4 %v1839_v10  ;;  %v87_v13 = vld [vmem:[%s2187_s0] sm:$0xff]  ;;  %vm83_vm1 = vcmask 254976   ;;  %v82_v22 = vld [vmem:[#allocation6] sm:$0x3]  ;;  %v1952_v27 = vld [vmem:[#allocation9] sm:$0xff]  }
  0x2a   :  { %v92_v7 = vunpack.c.0.s8 %v91_v3  ;;  %1533 = vmatpush3.bf16.msra.mxu0 %v1627_v12  ;;  %v89_v16 = vcombine.high %v87_v13, %v1835_v1  ;;  %v104_v18 = vcombine.high %v88_v14, %v1835_v1  ;;  %v1946_v20 = vld [vmem:[#allocation9 + $0x8] sm:$0xff]   ;;  %84 = vst.msk [vmem:[#allocation2] sm:$0x3] %vm83_vm1, %v82_v22  ;;  %vm361_vm2 = vcmask 261120   ;;  %v1470_v58 = vld [vmem:[#allocation11] ss:$0 sm:$0xff] }
  0x2b   :  { %v123_v8 = vunpack.c.0.s8 %v122_v6  ;;  %v186_v21 = vunpack.c.0.s8 %v185_v11  ;;  %1546 = vmatprep.subr.bf16.mxu0 %v1835_v1  ;;  %1539 = vmatpush3.bf16.msra.mxu1 %v1946_v20  ;;  %vm235_vm3 = vcmask 130048   ;;  %v85_v54 = vld [vmem:[%s2189_s2] sm:$0x3]  ;;  %s1840_s2 = smov 32   ;;  %vm452_vm4 = vcmask 253952   ;;  %s1842_s30 = smov [#allocation13]  }
  0x2c   :  { %v1929_v9 = vsub.s32 %v92_v7, %v94_v4  ;;  %1540 = vmatprep.subr.bf16.mxu1 %v1835_v1  ;;  %86 = vst.msk [vmem:[#allocation3] sm:$0x3] %vm83_vm1, %v85_v54  ;;  %s1443_s13 = sshll.u32 %s1842_s30, 4  ;;  %s1444_s13 = int_to_ptr.vmem [resolvable:$true] %s1443_s13 }
  0x2d   :  { %v1940_v15 = vsub.s32 %v123_v8, %v94_v4  ;;  %v1958_v32 = vsub.s32 %v186_v21, %v94_v4  ;;  %s1762_s14 = scalar_lea.vmem %s1444_s13, 32  ;;  %p1767_p2 = scmp.lt.s32.totalorder %s1444_s13, %s1444_s13 }
  0x2e   :  { %v96_v17 = vrot.slane %v87_v13, %v1929_v9  ;;  %v111_v19 = vrot.slane %v88_v14, %v1929_v9  ;;  %v103_v23 = vrot.slane %v89_v16, %v1929_v9  ;;  %v118_v24 = vrot.slane %v104_v18, %v1929_v9  ;;  %p1763_p1 = scmp.ne.s32.totalorder %s1444_s13, %s1762_s14  ;;  %p1768_p3 = scmp.lt.s32.totalorder %s1762_s14, %s1762_s14 }
  0x2f   :  { %1541 = vmatpush3.bf16.msra.mxu1 %v1952_v27 }
  0x30   :  { %v119_v25 = vcombine.low %v96_v17, %v111_v19  ;;  %v120_v26 = vcombine.high %v96_v17, %v111_v19  ;;  %v135_v30 = vcombine.low %v103_v23, %v118_v24  ;;  %v136_v31 = vcombine.high %v103_v23, %v118_v24  ;;  %1554 = vmatprep.subr.bf16.mxu1 %v1835_v1  ;;  %p1769_p4 = por %p1768_p3, %p1767_p2 }
  0x31   :  { %v344_v41 = vld [vmem:[#allocation2] sm:$0x3] }
  0x32   :  { %v127_v28 = vrot.slane %v119_v25, %v1940_v15  ;;  %v134_v29 = vrot.slane %v120_v26, %v1940_v15  ;;  %v143_v33 = vrot.slane %v135_v30, %v1940_v15  ;;  %v150_v34 = vrot.slane %v136_v31, %v1940_v15  ;;  %p1770_p5 = pnand %p1769_p4, %p1763_p1 }
  0x33   :  { %v346_v46 = vpack.c.bf16 %v344_v41, %v344_v41 }
  0x34   :  { %v151_v35 = vcombine.high %v127_v28, %v1835_v1  ;;  %v152_v36 = vcombine.high %v134_v29, %v1835_v1  ;;  %v153_v37 = vcombine.high %v143_v33, %v1835_v1  ;;  %v154_v38 = vcombine.high %v150_v34, %v1835_v1 }
  0x35   :  { %1543 = vmatmul.mubr.msk.bf16.vlgmr.msra.gmra.mxu1 %vm361_vm2, %v346_v46 }
  0x36   :  { %v1471_v39 = vpack.c.bf16 %v151_v35, %v127_v28  ;;  %v1472_v40 = vpack.c.bf16 %v152_v36, %v134_v29  ;;  %v1473_v42 = vpack.c.bf16 %v153_v37, %v143_v33  ;;  %v1474_v43 = vpack.c.bf16 %v154_v38, %v150_v34  ;;  %1555 = vmatpush3.bf16.msra.mxu1 %v1946_v20  ;;  %v345_v29 = vld [vmem:[#allocation3] sm:$0x3] }
  0x37   :  { %1558 = vmatprep.mubr.msk.bf16.mxu1 %vm1836_vm0, %v1835_v1  ;;  %1556 = vmatprep.subr.bf16.mxu1 %v1835_v1 }
  0x38   :  { %v190_v44 = vrot.slane %v1471_v39, %v1958_v32  ;;  %v197_v45 = vrot.slane %v1472_v40, %v1958_v32  ;;  %v204_v47 = vrot.slane %v1473_v42, %v1958_v32  ;;  %v211_v48 = vrot.slane %v1474_v43, %v1958_v32 }
  0x3a   :  { %v212_v49 = vcombine.low %v190_v44, %v197_v45  ;;  %v213_v50 = vcombine.low %v204_v47, %v211_v48  ;;  %1557 = vmatpush3.bf16.msra.mxu1 %v1952_v27 }
  0x3b   :  { %1570 = vmatprep.subr.bf16.mxu1 %v1835_v1 }
  0x3c   :  { %v220_v51 = vrot.slane %v212_v49, %v1958_v32  ;;  %v227_v52 = vrot.slane %v213_v50, %v1958_v32 }
  0x3e   :  { %v228_v53 = vcombine.low %v220_v51, %v227_v52 }
  0x40   :  { %1535 = vmatmul.mubr.msk.bf16.vlgmr.msra.gmra.mxu0 %vm235_vm3, %v228_v53 }
  0x41   :  { %1547 = vmatpush3.bf16.msra.mxu0 %v1946_v20  ;;  %1550 = vmatprep.mubr.msk.bf16.mxu0 %vm1836_vm0, %v1835_v1 }
  0x42   :  { %1548 = vmatprep.subr.bf16.mxu0 %v1835_v1 }
  0x45   :  { %1549 = vmatpush3.bf16.msra.mxu0 %v1952_v27 }
  0x46   :  { %1562 = vmatprep.subr.bf16.mxu0 %v1835_v1 }
  0xf5   :  { %v399_v55 = vpop.f32.mrf.mxu1 }
  0xf7   :  { %v1544_v56 = vpop.f32.mrf.mxu1 }
  0xf9   :  { %v402_v57 = vpop.f32.mrf.mxu1 }
  0xfb   :  { %v1545_v59 = vpop.f32.mrf.mxu1 }
 0x100   :  { %v273_v60 = vpop.f32.mrf.mxu0 }
 0x101   :  { %v274_v61 = vadd.f32 %v1470_v58, %v273_v60 }
 0x102   :  { %v1536_v62 = vpop.f32.mrf.mxu0 }
 0x103   :  { %v282_v63 = vcombine.high %v274_v61, %v274_v61  ;;  %v289_v0 = vrot.slane %v274_v61, %v1929_v9 }
 0x104   :  { %v276_v2 = vpop.f32.mrf.mxu0 }
 0x105   :  { %v296_v3 = vrot.slane %v282_v63, %v1929_v9  ;;  %v297_v4 = vcombine.high %v289_v0, %v289_v0  ;;  %v324_v5 = vpack.c.bf16 %v289_v0, %v289_v0  ;;  %v277_v6 = vadd.f32 %v1470_v58, %v276_v2 }
 0x106   :  { %v1537_v7 = vpop.f32.mrf.mxu0 }
 0x107   :  { %v298_v8 = vcombine.high %v296_v3, %v296_v3  ;;  %v325_v10 = vpack.c.bf16 %v297_v4, %v297_v4  ;;  %v326_v11 = vpack.c.bf16 %v296_v3, %v296_v3  ;;  %332 = vst [vmem:[#allocation4] sm:$0x1] %v324_v5  ;;  %v299_v12 = vcombine.high %v277_v6, %v277_v6 }
 0x108   :  { %v306_v13 = vrot.slane %v277_v6, %v1929_v9 }
 0x109   :  { %v327_v14 = vpack.c.bf16 %v298_v8, %v298_v8  ;;  %333 = vst [vmem:[#allocation4 + $0x1] sm:$0x1] %v325_v10  ;;  %334 = vst [vmem:[#allocation4 + $0x2] sm:$0x1] %v326_v11  ;;  %v313_v16 = vrot.slane %v299_v12, %v1929_v9 }
 0x10a   :  { %v314_v17 = vcombine.high %v306_v13, %v306_v13  ;;  %v328_v18 = vpack.c.bf16 %v306_v13, %v306_v13 }
 0x10b   :  { %335 = vst [vmem:[#allocation4 + $0x3] sm:$0x1] %v327_v14  ;;  %v315_v19 = vcombine.high %v313_v16, %v313_v16  ;;  %v330_v21 = vpack.c.bf16 %v313_v16, %v313_v16 }
 0x10c   :  { %v329_v22 = vpack.c.bf16 %v314_v17, %v314_v17  ;;  %336 = vst [vmem:[#allocation4 + $0x4] sm:$0x1] %v328_v18 }
 0x10d   :  { %v331_v23 = vpack.c.bf16 %v315_v19, %v315_v19  ;;  %338 = vst [vmem:[#allocation4 + $0x6] sm:$0x1] %v330_v21 }
 0x10e   :  { %337 = vst [vmem:[#allocation4 + $0x5] sm:$0x1] %v329_v22  ;;  %v347_v24 = vld [vmem:[#allocation4] sm:$0x1] }
 0x10f   :  { %339 = vst [vmem:[#allocation4 + $0x7] sm:$0x1] %v331_v23  ;;  %v348_v25 = vunpack.c.l.bf16 %v347_v24 }
 0x110   :  { %v455_v46 = vld [vmem:[#allocation4 + $0x1] sm:$0x1]  ;;  %v548_v5 = vld [vmem:[#allocation4 + $0x2] sm:$0x1] }
 0x111   :  { %v400_v26 = vadd.f32 %v399_v55, %v348_v25  ;;  %v456_v47 = vunpack.c.l.bf16 %v455_v46  ;;  %v549_v6 = vunpack.c.l.bf16 %v548_v5 }
 0x113   :  { %1632 = vtanh.f32 %v400_v26  ;;  %v1480_v30 = vmul.f32 -1.442695, %v400_v26 }
 0x115   :  { %1634 = vpow2.f32 %v1480_v30 }
 0x120   :  { %v1633_v28 = vpop.eup %1632 }
 0x121   :  { %418 = vrot.lane.b32.xlu0 %v1633_v28, %s1831_s24 }
 0x122   :  { %v1635_v31 = vpop.eup %1634 }
 0x123   :  { %v408_v33 = vadd.f32 1.0, %v1635_v31  ;;  %v641_v31 = vld [vmem:[#allocation4 + $0x3] sm:$0x1] }
 0x125   :  { %413 = vrot.lane.b32.xlu0 %v345_v29, %s1840_s2  ;;  %1636 = vrcp.f32 %v408_v33  ;;  %v642_v33 = vunpack.c.l.bf16 %v641_v31 }
 0x132   :  { %v1637_v34 = vpop.eup %1636 }
 0x193   :  { %v419_v35 = vpop.permute.xlu0 %418 }
 0x194   :  { %v421_v36 = vmul.f32 %v1637_v34, %v419_v35 }
 0x196   :  { %423 = vrot.lane.b32.xlu1 %v421_v36, %s1840_s2 }
 0x197   :  { %v414_v37 = vpop.permute.xlu0 %413 }
 0x198   :  { %v416_v38 = vmul.f32 %v1637_v34, %v414_v37 }
 0x208   :  { %v424_v39 = vpop.permute.xlu1 %423 }
 0x209   :  { %v426_v40 = vadd.f32 %v424_v39, %v416_v38 }
 0x20b   :  { %1638 = vtanh.f32 %v426_v40 }
 0x218   :  { %v1639_v41 = vpop.eup %1638 }
 0x219   :  { %429 = vrot.lane.b32.xlu1 %v1639_v41, %s1831_s24 }
 0x28b   :  { %v430_v42 = vpop.permute.xlu1 %429 }
 0x28c   :  { %v432_v43 = vmul.f32 %v1637_v34, %v430_v42 }
 0x28e   :  { %v2000_v44 = vpack.c.bf16 %v432_v43, %v432_v43 }
 0x290   :  { %457 = vrot.lane.b32.xlu0 %v2000_v44, %s1840_s2 }
 0x302   :  { %v458_v45 = vpop.permute.xlu0 %457 }
 0x303   :  { %1551 = vmatmul.mubr.msk.bf16.vlgmr.msra.gmra.mxu0 %vm361_vm2, %v458_v45 }
 0x304   :  { %1563 = vmatpush3.bf16.msra.mxu0 %v1946_v20  ;;  %1566 = vmatprep.mubr.msk.bf16.mxu0 %vm1836_vm0, %v1835_v1 }
 0x305   :  { %1564 = vmatprep.subr.bf16.mxu0 %v1835_v1 }
 0x308   :  { %1565 = vmatpush3.bf16.msra.mxu0 %v1952_v27 }
 0x309   :  { %1578 = vmatprep.subr.bf16.mxu0 %v1835_v1 }
 0x3c3   :  { %v496_v48 = vpop.f32.mrf.mxu0 }
 0x3c4   :  { %v497_v49 = vadd.f32 %v496_v48, %v456_v47 }
 0x3c5   :  { %v1552_v50 = vpop.f32.mrf.mxu0 }
 0x3c6   :  { %1640 = vtanh.f32 %v497_v49  ;;  %v1482_v54 = vmul.f32 -1.442695, %v497_v49 }
 0x3c7   :  { %v499_v51 = vpop.f32.mrf.mxu0 }
 0x3c8   :  { %1642 = vpow2.f32 %v1482_v54 }
 0x3c9   :  { %v1553_v52 = vpop.f32.mrf.mxu0 }
 0x3d3   :  { %v1641_v53 = vpop.eup %1640 }
 0x3d4   :  { %511 = vrot.lane.b32.xlu1 %v1641_v53, %s1831_s24 }
 0x3d5   :  { %v1643_v55 = vpop.eup %1642 }
 0x3d6   :  { %v505_v56 = vadd.f32 1.0, %v1643_v55  ;;  %v734_v55 = vld [vmem:[#allocation4 + $0x4] sm:$0x1] }
 0x3d8   :  { %1644 = vrcp.f32 %v505_v56  ;;  %v735_v56 = vunpack.c.l.bf16 %v734_v55 }
 0x3e5   :  { %v1645_v57 = vpop.eup %1644 }
 0x3e6   :  { %v509_v60 = vmul.f32 %v1645_v57, %v426_v40 }
 0x446   :  { %v512_v58 = vpop.permute.xlu1 %511 }
 0x447   :  { %v514_v59 = vmul.f32 %v1645_v57, %v512_v58 }
 0x449   :  { %516 = vrot.lane.b32.xlu0 %v514_v59, %s1840_s2 }
 0x4bb   :  { %v517_v61 = vpop.permute.xlu0 %516 }
 0x4bc   :  { %v519_v62 = vadd.f32 %v517_v61, %v509_v60 }
 0x4be   :  { %1646 = vtanh.f32 %v519_v62 }
 0x4cb   :  { %v1647_v63 = vpop.eup %1646 }
 0x4cc   :  { %522 = vrot.lane.b32.xlu1 %v1647_v63, %s1831_s24 }
 0x53e   :  { %v523_v0 = vpop.permute.xlu1 %522 }
 0x53f   :  { %v525_v2 = vmul.f32 %v1645_v57, %v523_v0 }
 0x541   :  { %v2014_v3 = vpack.c.bf16 %v525_v2, %v525_v2 }
 0x543   :  { %550 = vrot.lane.b32.xlu0 %v2014_v3, %s1840_s2 }
 0x5b5   :  { %v551_v4 = vpop.permute.xlu0 %550 }
 0x5b6   :  { %1559 = vmatmul.mubr.msk.bf16.vlgmr.msra.gmra.mxu1 %vm361_vm2, %v551_v4 }
 0x5b7   :  { %1571 = vmatpush3.bf16.msra.mxu1 %v1946_v20  ;;  %1574 = vmatprep.mubr.msk.bf16.mxu1 %vm1836_vm0, %v1835_v1 }
 0x5b8   :  { %1572 = vmatprep.subr.bf16.mxu1 %v1835_v1 }
 0x5bb   :  { %1573 = vmatpush3.bf16.msra.mxu1 %v1952_v27 }
 0x5bc   :  { %1586 = vmatprep.subr.bf16.mxu1 %v1835_v1 }
 0x676   :  { %v589_v7 = vpop.f32.mrf.mxu1 }
 0x677   :  { %v590_v8 = vadd.f32 %v589_v7, %v549_v6 }
 0x678   :  { %v1560_v10 = vpop.f32.mrf.mxu1 }
 0x679   :  { %1648 = vtanh.f32 %v590_v8  ;;  %v1484_v14 = vmul.f32 -1.442695, %v590_v8 }
 0x67a   :  { %v592_v11 = vpop.f32.mrf.mxu1 }
 0x67b   :  { %1650 = vpow2.f32 %v1484_v14 }
 0x67c   :  { %v1561_v12 = vpop.f32.mrf.mxu1 }
 0x686   :  { %v1649_v13 = vpop.eup %1648 }
 0x687   :  { %604 = vrot.lane.b32.xlu1 %v1649_v13, %s1831_s24 }
 0x688   :  { %v1651_v16 = vpop.eup %1650 }
 0x689   :  { %v598_v17 = vadd.f32 1.0, %v1651_v16 }
 0x68b   :  { %1652 = vrcp.f32 %v598_v17  ;;  %v827_v17 = vld [vmem:[#allocation4 + $0x5] sm:$0x1] }
 0x698   :  { %v1653_v18 = vpop.eup %1652 }
 0x699   :  { %v602_v22 = vmul.f32 %v1653_v18, %v519_v62 }
 0x6f9   :  { %v605_v19 = vpop.permute.xlu1 %604 }
 0x6fa   :  { %v607_v21 = vmul.f32 %v1653_v18, %v605_v19 }
 0x6fc   :  { %609 = vrot.lane.b32.xlu0 %v607_v21, %s1840_s2 }
 0x76e   :  { %v610_v23 = vpop.permute.xlu0 %609 }
 0x76f   :  { %v612_v24 = vadd.f32 %v610_v23, %v602_v22 }
 0x771   :  { %1654 = vtanh.f32 %v612_v24 }
 0x77e   :  { %v1655_v25 = vpop.eup %1654 }
 0x77f   :  { %615 = vrot.lane.b32.xlu1 %v1655_v25, %s1831_s24 }
 0x7f1   :  { %v616_v26 = vpop.permute.xlu1 %615 }
 0x7f2   :  { %v618_v28 = vmul.f32 %v1653_v18, %v616_v26  ;;  %v828_v18 = vunpack.c.l.bf16 %v827_v17 }
 0x7f4   :  { %v2028_v29 = vpack.c.bf16 %v618_v28, %v618_v28 }
 0x7f6   :  { %643 = vrot.lane.b32.xlu0 %v2028_v29, %s1840_s2 }
 0x868   :  { %v644_v30 = vpop.permute.xlu0 %643 }
 0x869   :  { %1567 = vmatmul.mubr.msk.bf16.vlgmr.msra.gmra.mxu0 %vm361_vm2, %v644_v30 }
 0x86a   :  { %1579 = vmatpush3.bf16.msra.mxu0 %v1946_v20  ;;  %1582 = vmatprep.mubr.msk.bf16.mxu0 %vm1836_vm0, %v1835_v1 }
 0x86b   :  { %1580 = vmatprep.subr.bf16.mxu0 %v1835_v1 }
 0x86e   :  { %1581 = vmatpush3.bf16.msra.mxu0 %v1952_v27 }
 0x86f   :  { %1594 = vmatprep.subr.bf16.mxu0 %v1835_v1 }
 0x929   :  { %v682_v34 = vpop.f32.mrf.mxu0 }
 0x92a   :  { %v683_v35 = vadd.f32 %v682_v34, %v642_v33 }
 0x92b   :  { %v1568_v36 = vpop.f32.mrf.mxu0 }
 0x92c   :  { %1656 = vtanh.f32 %v683_v35  ;;  %v1486_v40 = vmul.f32 -1.442695, %v683_v35 }
 0x92d   :  { %v685_v37 = vpop.f32.mrf.mxu0 }
 0x92e   :  { %1658 = vpow2.f32 %v1486_v40 }
 0x92f   :  { %v1569_v38 = vpop.f32.mrf.mxu0 }
 0x939   :  { %v1657_v39 = vpop.eup %1656 }
 0x93a   :  { %697 = vrot.lane.b32.xlu1 %v1657_v39, %s1831_s24 }
 0x93b   :  { %v1659_v41 = vpop.eup %1658 }
 0x93c   :  { %v691_v42 = vadd.f32 1.0, %v1659_v41  ;;  %v920_v41 = vld [vmem:[#allocation4 + $0x6] sm:$0x1] }
 0x93e   :  { %1660 = vrcp.f32 %v691_v42  ;;  %v921_v42 = vunpack.c.l.bf16 %v920_v41  ;;  %v1630_v41 = vld [vmem:[%s2193_s6 + $0x8] sm:$0xff]  }
 0x94b   :  { %v1661_v43 = vpop.eup %1660 }
 0x94c   :  { %v695_v47 = vmul.f32 %v1661_v43, %v612_v24 }
 0x9ac   :  { %v698_v45 = vpop.permute.xlu1 %697 }
 0x9ad   :  { %v700_v46 = vmul.f32 %v1661_v43, %v698_v45 }
 0x9af   :  { %702 = vrot.lane.b32.xlu0 %v700_v46, %s1840_s2 }
 0xa21   :  { %v703_v48 = vpop.permute.xlu0 %702 }
 0xa22   :  { %v705_v49 = vadd.f32 %v703_v48, %v695_v47 }
 0xa24   :  { %1662 = vtanh.f32 %v705_v49 }
 0xa31   :  { %v1663_v50 = vpop.eup %1662 }
 0xa32   :  { %708 = vrot.lane.b32.xlu1 %v1663_v50, %s1831_s24 }
 0xaa4   :  { %v709_v51 = vpop.permute.xlu1 %708 }
 0xaa5   :  { %v711_v52 = vmul.f32 %v1661_v43, %v709_v51 }
 0xaa7   :  { %v2042_v53 = vpack.c.bf16 %v711_v52, %v711_v52 }
 0xaa9   :  { %736 = vrot.lane.b32.xlu0 %v2042_v53, %s1840_s2 }
 0xb1b   :  { %v737_v54 = vpop.permute.xlu0 %736 }
 0xb1c   :  { %1575 = vmatmul.mubr.msk.bf16.vlgmr.msra.gmra.mxu1 %vm361_vm2, %v737_v54 }
 0xb1d   :  { %1587 = vmatpush3.bf16.msra.mxu1 %v1946_v20  ;;  %1590 = vmatprep.mubr.msk.bf16.mxu1 %vm1836_vm0, %v1835_v1 }
 0xb1e   :  { %1588 = vmatprep.subr.bf16.mxu1 %v1835_v1 }
 0xb21   :  { %1589 = vmatpush3.bf16.msra.mxu1 %v1952_v27 }
 0xb22   :  { %1602 = vmatprep.subr.bf16.mxu1 %v1835_v1 }
 0xbdc   :  { %v775_v57 = vpop.f32.mrf.mxu1 }
 0xbdd   :  { %v776_v58 = vadd.f32 %v775_v57, %v735_v56 }
 0xbde   :  { %v1576_v59 = vpop.f32.mrf.mxu1 }
 0xbdf   :  { %1664 = vtanh.f32 %v776_v58  ;;  %v1488_v63 = vmul.f32 -1.442695, %v776_v58 }
 0xbe0   :  { %v778_v60 = vpop.f32.mrf.mxu1 }
 0xbe1   :  { %1666 = vpow2.f32 %v1488_v63 }
 0xbe2   :  { %v1577_v61 = vpop.f32.mrf.mxu1 }
 0xbec   :  { %v1665_v62 = vpop.eup %1664 }
 0xbed   :  { %790 = vrot.lane.b32.xlu1 %v1665_v62, %s1831_s24 }
 0xbee   :  { %v1667_v0 = vpop.eup %1666 }
 0xbef   :  { %v784_v2 = vadd.f32 1.0, %v1667_v0 }
 0xbf1   :  { %1668 = vrcp.f32 %v784_v2  ;;  %v1013_v2 = vld [vmem:[#allocation4 + $0x7] sm:$0x1] }
 0xbfe   :  { %v1669_v4 = vpop.eup %1668 }
 0xbff   :  { %v788_v7 = vmul.f32 %v1669_v4, %v705_v49 }
 0xc5f   :  { %v791_v5 = vpop.permute.xlu1 %790 }
 0xc60   :  { %v793_v6 = vmul.f32 %v1669_v4, %v791_v5 }
 0xc62   :  { %795 = vrot.lane.b32.xlu0 %v793_v6, %s1840_s2 }
 0xcd4   :  { %v796_v8 = vpop.permute.xlu0 %795 }
 0xcd5   :  { %v798_v10 = vadd.f32 %v796_v8, %v788_v7 }
 0xcd7   :  { %1670 = vtanh.f32 %v798_v10 }
 0xce4   :  { %v1671_v11 = vpop.eup %1670 }
 0xce5   :  { %801 = vrot.lane.b32.xlu1 %v1671_v11, %s1831_s24 }
 0xd57   :  { %v802_v12 = vpop.permute.xlu1 %801 }
 0xd58   :  { %v804_v13 = vmul.f32 %v1669_v4, %v802_v12  ;;  %v1014_v4 = vunpack.c.l.bf16 %v1013_v2 }
 0xd5a   :  { %v2056_v14 = vpack.c.bf16 %v804_v13, %v804_v13 }
 0xd5c   :  { %829 = vrot.lane.b32.xlu0 %v2056_v14, %s1840_s2 }
 0xdce   :  { %v830_v16 = vpop.permute.xlu0 %829 }
 0xdcf   :  { %1583 = vmatmul.mubr.msk.bf16.vlgmr.msra.gmra.mxu0 %vm361_vm2, %v830_v16 }
 0xdd0   :  { %1595 = vmatpush3.bf16.msra.mxu0 %v1946_v20  ;;  %1598 = vmatprep.mubr.msk.bf16.mxu0 %vm1836_vm0, %v1835_v1 }
 0xdd1   :  { %1596 = vmatprep.subr.bf16.mxu0 %v1835_v1 }
 0xdd4   :  { %1597 = vmatpush3.bf16.msra.mxu0 %v1952_v27 }
 0xe8f   :  { %v868_v19 = vpop.f32.mrf.mxu0 }
 0xe90   :  { %v869_v21 = vadd.f32 %v868_v19, %v828_v18  ;;  %v441_v19 = vrot.slane %v2000_v44, %v1958_v32 }
 0xe91   :  { %v1584_v22 = vpop.f32.mrf.mxu0 }
 0xe92   :  { %1672 = vtanh.f32 %v869_v21  ;;  %v1490_v26 = vmul.f32 -1.442695, %v869_v21  ;;  %v627_v22 = vrot.slane %v2028_v29, %v1958_v32 }
 0xe93   :  { %v871_v23 = vpop.f32.mrf.mxu0 }
 0xe94   :  { %1674 = vpow2.f32 %v1490_v26  ;;  %v448_v23 = vrot.slane %v441_v19, %v1958_v32 }
 0xe95   :  { %v1585_v24 = vpop.f32.mrf.mxu0 }
 0xe96   :  { %v813_v24 = vrot.slane %v2056_v14, %v1958_v32 }
 0xe98   :  { %v820_v44 = vrot.slane %v813_v24, %v1958_v32 }
 0xe9f   :  { %v1673_v25 = vpop.eup %1672 }
 0xea0   :  { %883 = vrot.lane.b32.xlu1 %v1673_v25, %s1831_s24  ;;  %v634_v25 = vrot.slane %v627_v22, %v1958_v32 }
 0xea1   :  { %v1675_v20 = vpop.eup %1674 }
 0xea2   :  { %v877_v28 = vadd.f32 1.0, %v1675_v20 }
 0xea4   :  { %1676 = vrcp.f32 %v877_v28 }
 0xeb1   :  { %v1677_v30 = vpop.eup %1676 }
 0xeb2   :  { %v881_v27 = vmul.f32 %v1677_v30, %v798_v10 }
 0xf12   :  { %v884_v31 = vpop.permute.xlu1 %883 }
 0xf13   :  { %v886_v33 = vmul.f32 %v1677_v30, %v884_v31 }
 0xf15   :  { %888 = vrot.lane.b32.xlu0 %v886_v33, %s1840_s2 }
 0xf87   :  { %v889_v34 = vpop.permute.xlu0 %888 }
 0xf88   :  { %v891_v35 = vadd.f32 %v889_v34, %v881_v27  ;;  %v534_v27 = vrot.slane %v2014_v3, %v1958_v32 }
 0xf8a   :  { %1678 = vtanh.f32 %v891_v35 }
 0xf97   :  { %v1679_v36 = vpop.eup %1678 }
 0xf98   :  { %894 = vrot.lane.b32.xlu1 %v1679_v36, %s1831_s24  ;;  %v720_v36 = vrot.slane %v2042_v53, %v1958_v32  ;;  %v1631_v53 = vld [vmem:[%s2193_s6] sm:$0xff]  }
0x100a   :  { %v895_v37 = vpop.permute.xlu1 %894 }
0x100b   :  { %v897_v38 = vmul.f32 %v1677_v30, %v895_v37  ;;  %v541_v37 = vrot.slane %v534_v27, %v1958_v32 }
0x100d   :  { %v2069_v39 = vpack.c.bf16 %v897_v38, %v897_v38 }
0x100f   :  { %922 = vrot.lane.b32.xlu0 %v2069_v39, %s1840_s2  ;;  %v906_v38 = vrot.slane %v2069_v39, %v1958_v32 }
0x1011   :  { %v913_v3 = vrot.slane %v906_v38, %v1958_v32 }
0x1081   :  { %v923_v40 = vpop.permute.xlu0 %922 }
0x1082   :  { %1591 = vmatmul.mubr.msk.bf16.vlgmr.msra.gmra.mxu1 %vm361_vm2, %v923_v40  ;;  %v727_v40 = vrot.slane %v720_v36, %v1958_v32 }
0x1083   :  { %1606 = vmatprep.mubr.msk.bf16.mxu1 %vm1836_vm0, %v1835_v1  ;;  %1603 = vmatpush3.bf16.msra.mxu1 %v1630_v41 }
0x1084   :  { %1604 = vmatprep.subr.bf16.mxu1 %v1835_v1 }
0x1087   :  { %1605 = vmatpush3.bf16.msra.mxu1 %v1631_v53 }
0x1142   :  { %v961_v43 = vpop.f32.mrf.mxu1 }
0x1143   :  { %v962_v45 = vadd.f32 %v961_v43, %v921_v42 }
0x1144   :  { %v1592_v46 = vpop.f32.mrf.mxu1 }
0x1145   :  { %1680 = vtanh.f32 %v962_v45  ;;  %v1492_v50 = vmul.f32 -1.442695, %v962_v45 }
0x1146   :  { %v964_v47 = vpop.f32.mrf.mxu1 }
0x1147   :  { %1682 = vpow2.f32 %v1492_v50 }
0x1148   :  { %v1593_v48 = vpop.f32.mrf.mxu1 }
0x1152   :  { %v1681_v49 = vpop.eup %1680 }
0x1153   :  { %976 = vrot.lane.b32.xlu1 %v1681_v49, %s1831_s24 }
0x1154   :  { %v1683_v51 = vpop.eup %1682 }
0x1155   :  { %v970_v52 = vadd.f32 1.0, %v1683_v51 }
0x1157   :  { %1684 = vrcp.f32 %v970_v52 }
0x1164   :  { %v1685_v54 = vpop.eup %1684 }
0x1165   :  { %v974_v57 = vmul.f32 %v1685_v54, %v891_v35 }
0x11c5   :  { %v977_v55 = vpop.permute.xlu1 %976 }
0x11c6   :  { %v979_v56 = vmul.f32 %v1685_v54, %v977_v55 }
0x11c8   :  { %981 = vrot.lane.b32.xlu0 %v979_v56, %s1840_s2 }
0x123a   :  { %v982_v58 = vpop.permute.xlu0 %981 }
0x123b   :  { %v984_v59 = vadd.f32 %v982_v58, %v974_v57 }
0x123d   :  { %1686 = vtanh.f32 %v984_v59 }
0x124a   :  { %v1687_v60 = vpop.eup %1686 }
0x124b   :  { %987 = vrot.lane.b32.xlu1 %v1687_v60, %s1831_s24 }
0x12bd   :  { %v988_v61 = vpop.permute.xlu1 %987 }
0x12be   :  { %v990_v62 = vmul.f32 %v1685_v54, %v988_v61 }
0x12c0   :  { %v991_v63 = vpack.c.bf16 %v990_v62, %v990_v62 }
0x12c2   :  { %1015 = vrot.lane.b32.xlu0 %v991_v63, %s1840_s2  ;;  %v999_v26 = vrot.slane %v991_v63, %v1958_v32 }
0x12c4   :  { %v1006_v20 = vrot.slane %v999_v26, %v1958_v32 }
0x1334   :  { %v1016_v0 = vpop.permute.xlu0 %1015 }
0x1335   :  { %1599 = vmatmul.mubr.msk.bf16.vlgmr.msra.gmra.mxu0 %vm361_vm2, %v1016_v0 }
0x13f5   :  { %v1054_v5 = vpop.f32.mrf.mxu0 }
0x13f6   :  { %v1055_v6 = vadd.f32 %v1054_v5, %v1014_v4 }
0x13f7   :  { %v1600_v7 = vpop.f32.mrf.mxu0 }
0x13f8   :  { %1688 = vtanh.f32 %v1055_v6  ;;  %v1494_v12 = vmul.f32 -1.442695, %v1055_v6 }
0x13f9   :  { %v1057_v8 = vpop.f32.mrf.mxu0 }
0x13fa   :  { %1690 = vpow2.f32 %v1494_v12 }
0x13fb   :  { %v1601_v10 = vpop.f32.mrf.mxu0 }
0x1405   :  { %v1689_v11 = vpop.eup %1688 }
0x1406   :  { %1069 = vrot.lane.b32.xlu1 %v1689_v11, %s1831_s24  ;;  %v1495_v11 = vld [vmem:[%s2194_s7] ss:$0 sm:$0xff]  ;;  %s1841_s7 = smov 96  }
0x1407   :  { %v1691_v13 = vpop.eup %1690 }
0x1408   :  { %v1063_v16 = vadd.f32 1.0, %v1691_v13 }
0x140a   :  { %1692 = vrcp.f32 %v1063_v16 }
0x1417   :  { %v1693_v17 = vpop.eup %1692 }
0x1418   :  { %v1067_v29 = vmul.f32 %v1693_v17, %v984_v59 }
0x1478   :  { %v1070_v18 = vpop.permute.xlu1 %1069 }
0x1479   :  { %v1072_v21 = vmul.f32 %v1693_v17, %v1070_v18 }
0x147b   :  { %1074 = vrot.lane.b32.xlu0 %v1072_v21, %s1840_s2 }
0x147f   :  { %449 = vrot.lane.b32.xlu0 %v448_v23, %s1840_s2 }
0x1483   :  { %635 = vrot.lane.b32.xlu0 %v634_v25, %s1840_s2 }
0x1487   :  { %821 = vrot.lane.b32.xlu0 %v820_v44, %s1840_s2 }
0x148b   :  { %1007 = vrot.lane.b32.xlu0 %v1006_v20, %s1840_s2 }
0x14ed   :  { %v1075_v28 = vpop.permute.xlu0 %1074 }
0x14ee   :  { %v2098_v30 = vadd.f32 %v1075_v28, %v1067_v29 }
0x14f0   :  { %1694 = vtanh.f32 %v2098_v30 }
0x14f1   :  { %v450_v14 = vpop.permute.xlu0 %449 }
0x14f2   :  { %453 = vst.msk [vmem:[#allocation5] sm:$0x1] %vm452_vm4, %v450_v14 }
0x14f5   :  { %v636_v31 = vpop.permute.xlu0 %635 }
0x14f6   :  { %639 = vst.msk [vmem:[#allocation5 + $0x2] sm:$0x1] %vm452_vm4, %v636_v31 }
0x14f9   :  { %v822_v33 = vpop.permute.xlu0 %821  ;;  %v1118_v55 = vld [vmem:[#allocation5] sm:$0x1] }
0x14fa   :  { %825 = vst.msk [vmem:[#allocation5 + $0x4] sm:$0x1] %vm452_vm4, %v822_v33 }
0x14fd   :  { %v1695_v34 = vpop.eup %1694  ;;  %v1008_v35 = vpop.permute.xlu0 %1007  ;;  %v1120_v52 = vld [vmem:[#allocation5 + $0x2] sm:$0x1] }
0x14fe   :  { %1011 = vst.msk [vmem:[#allocation5 + $0x6] sm:$0x1] %vm452_vm4, %v1008_v35  ;;  %1080 = vrot.lane.b32.xlu1 %v1695_v34, %s1831_s24 }
0x1501   :  { %v1122_v58 = vld [vmem:[#allocation5 + $0x4] sm:$0x1] }
0x1502   :  { %542 = vrot.lane.b32.xlu1 %v541_v37, %s1840_s2 }
0x1505   :  { %v1124_v61 = vld [vmem:[#allocation5 + $0x6] sm:$0x1] }
0x1506   :  { %728 = vrot.lane.b32.xlu1 %v727_v40, %s1840_s2 }
0x150a   :  { %914 = vrot.lane.b32.xlu1 %v913_v3, %s1840_s2 }
0x1570   :  { %v1081_v39 = vpop.permute.xlu1 %1080 }
0x1571   :  { %v1083_v42 = vmul.f32 %v1693_v17, %v1081_v39 }
0x1573   :  { %v1084_v43 = vpack.c.bf16 %v1083_v42, %v1083_v42 }
0x1574   :  { %v543_v45 = vpop.permute.xlu1 %542 }
0x1575   :  { %v1092_v46 = vrot.slane %v1084_v43, %v1958_v32  ;;  %546 = vst.msk [vmem:[#allocation5 + $0x1] sm:$0x1] %vm452_vm4, %v543_v45 }
0x1577   :  { %v1099_v47 = vrot.slane %v1092_v46, %v1958_v32 }
0x1578   :  { %v729_v48 = vpop.permute.xlu1 %728 }
0x1579   :  { %732 = vst.msk [vmem:[#allocation5 + $0x3] sm:$0x1] %vm452_vm4, %v729_v48  ;;  %1100 = vrot.lane.b32.xlu1 %v1099_v47, %s1840_s2 }
0x157c   :  { %v915_v49 = vpop.permute.xlu1 %914  ;;  %v1119_v51 = vld [vmem:[#allocation5 + $0x1] sm:$0x1] }
0x157d   :  { %918 = vst.msk [vmem:[#allocation5 + $0x5] sm:$0x1] %vm452_vm4, %v915_v49  ;;  %v1145_v57 = vcombine.low %v1118_v55, %v1119_v51 }
0x157f   :  { %v1155_v0 = vrot.slane %v1145_v57, %v1958_v32 }
0x1580   :  { %v1121_v50 = vld [vmem:[#allocation5 + $0x3] sm:$0x1] }
0x1581   :  { %v1146_v54 = vcombine.low %v1120_v52, %v1121_v50 }
0x1583   :  { %v1162_v60 = vrot.slane %v1146_v54, %v1958_v32 }
0x1584   :  { %v1123_v56 = vld [vmem:[#allocation5 + $0x5] sm:$0x1] }
0x1585   :  { %v1147_v59 = vcombine.low %v1122_v58, %v1123_v56  ;;  %v1177_v5 = vcombine.low %v1155_v0, %v1162_v60 }
0x1587   :  { %v1169_v2 = vrot.slane %v1147_v59, %v1958_v32  ;;  %v1185_v7 = vrot.slane %v1177_v5, %v1958_v32 }
0x15eb   :  { %v1101_v1 = vpop.permute.xlu1 %1100 }
0x15ec   :  { %1104 = vst.msk [vmem:[#allocation5 + $0x7] sm:$0x1] %vm452_vm4, %v1101_v1 }
0x15f3   :  { %v1125_v62 = vld [vmem:[#allocation5 + $0x7] sm:$0x1] }
0x15f4   :  { %v1148_v63 = vcombine.low %v1124_v61, %v1125_v62 }
0x15f6   :  { %v1176_v4 = vrot.slane %v1148_v63, %v1958_v32 }
0x15f8   :  { %v1178_v6 = vcombine.low %v1169_v2, %v1176_v4 }
0x15fa   :  { %v1192_v8 = vrot.slane %v1178_v6, %v1958_v32 }
0x15fc   :  { %v1193_v10 = vcombine.low %v1185_v7, %v1192_v8 }
0x15fe   :  { %1607 = vmatmul.mubr.msk.bf16.vlgmr.msra.gmra.mxu1 %vm361_vm2, %v1193_v10 }
0x16be   :  { %v1243_v12 = vpop.f32.mrf.mxu1 }
0x16bf   :  { %v1244_v13 = vadd.f32 %v1495_v11, %v1243_v12 }
0x16c0   :  { %v1608_v16 = vpop.f32.mrf.mxu1 }
0x16c1   :  { %v1250_v17 = vsel %vm235_vm3, %v1244_v13, 0.0 }
0x16c2   :  { %1251 = vadd.xlane.f32.xlu0 %v1250_v17  ;;  %v1246_v18 = vpop.f32.mrf.mxu1 }
0x16c3   :  { %v1247_v19 = vadd.f32 %v1495_v11, %v1246_v18 }
0x16c4   :  { %v1609_v21 = vpop.f32.mrf.mxu1 }
0x16c5   :  { %v1253_v22 = vsel %vm235_vm3, %v1247_v19, 0.0 }
0x16c6   :  { %1254 = vadd.xlane.f32.xlu1 %v1253_v22 }
0x16d7   :  { %1106 = vrot.lane.b32.xlu1 %v1083_v42, %s1840_s2 }
0x174b   :  { %v1252_v32 = vpop.xlane.xlu0 %1251 }
0x174c   :  { %v1257_v23 = vmul.f32 0.0625, %v1252_v32 }
0x174e   :  { %v1259_v24 = vsub.f32 %v1244_v13, %v1257_v23 }
0x174f   :  { %v1255_v25 = vpop.xlane.xlu1 %1254 }
0x1750   :  { %v1258_v26 = vmul.f32 0.0625, %v1255_v25  ;;  %v1261_v44 = vmul.f32 %v1259_v24, %v1259_v24 }
0x1752   :  { %v1260_v20 = vsub.f32 %v1247_v19, %v1258_v26  ;;  %v1263_v29 = vsel %vm235_vm3, %v1261_v44, 0.0 }
0x1753   :  { %1264 = vadd.xlane.f32.xlu0 %v1263_v29  ;;  %v1107_v28 = vpop.permute.xlu1 %1106 }
0x1754   :  { %1110 = vst.msk [vmem:[#allocation2] sm:$0x3] %vm83_vm1, %v1107_v28  ;;  %1116 = vst.msk [vmem:[#allocation13] sm:$0x3] %vm83_vm1, %v1107_v28  ;;  %v1262_v14 = vmul.f32 %v1260_v20, %v1260_v20 }
0x1756   :  { %v1266_v31 = vsel %vm235_vm3, %v1262_v14, 0.0 }
0x1757   :  { %1267 = vadd.xlane.f32.xlu0 %v1266_v31 }
0x176d   :  { %1112 = vrot.lane.b32.xlu0 %v2098_v30, %s1841_s7 }
0x176e   :  { %1773 = shalt.err (!%p1770_p5)
}
0x176f   :  { %1446 = dma.vmem_to_hbm [thread:$0]  %s1444_s13, 32, %s2198_s11, [#allocation14]  }
0x1770   :  { %s1843_s17 = smov [#allocation15]  }
0x1771   :  { %s1453_s4 = sshll.u32 %s1843_s17, 4  ;;  %s1454_s4 = int_to_ptr.vmem [resolvable:$true] %s1453_s4 }
0x1772   :  { %s1782_s18 = scalar_lea.vmem %s1454_s4, 32  ;;  %p1787_p7 = scmp.lt.s32.totalorder %s1454_s4, %s1454_s4 }
0x1773   :  { %p1783_p6 = scmp.ne.s32.totalorder %s1454_s4, %s1782_s18  ;;  %p1788_p8 = scmp.lt.s32.totalorder %s1782_s18, %s1782_s18 }
0x1775   :  { %p1789_p9 = por %p1788_p8, %p1787_p7 }
0x1777   :  { %p1790_p10 = pnand %p1789_p9, %p1783_p6 }
0x17dc   :  { %v1265_v33 = vpop.xlane.xlu0 %1264 }
0x17dd   :  { %v1269_v27 = vmul.f32 0.0625, %v1265_v33 }
0x17df   :  { %v1280_v34 = vadd.f32 1.1920929e-07, %v1269_v27 }
0x17e0   :  { %v1268_v35 = vpop.xlane.xlu0 %1267 }
0x17e1   :  { %1696 = vrsqrt.f32 %v1280_v34  ;;  %v1270_v30 = vmul.f32 0.0625, %v1268_v35 }
0x17e3   :  { %v1281_v36 = vadd.f32 1.1920929e-07, %v1270_v30 }
0x17e4   :  { %v1113_v37 = vpop.permute.xlu0 %1112 }
0x17e5   :  { %1698 = vrsqrt.f32 %v1281_v36  ;;  %1115 = vst.msk [vmem:[#allocation3] sm:$0x3] %vm83_vm1, %v1113_v37  ;;  %1117 = vst.msk [vmem:[#allocation15] sm:$0x3] %vm83_vm1, %v1113_v37 }
0x17e6   :  { %1793 = shalt.err (!%p1790_p10)
}
0x17e7   :  { %1456 = dma.vmem_to_hbm [thread:$0]  %s1454_s4, 32, %s2199_s12, [#allocation14]   ;;  %v1499_v38 = vld [vmem:[%s2195_s8] ss:$0 sm:$0xff]  ;;  %v1701_v17 = vld [vmem:[%s2187_s0 + $0x8] sm:$0xff] }
0x17e8   :  { %v1278_v40 = vmul.f32 %v1499_v38, %v1259_v24  ;;  %v1500_v41 = vld [vmem:[%s2196_s9] ss:$0 sm:$0xff]  ;;  %v1279_v39 = vmul.f32 %v1499_v38, %v1260_v20  ;;  %s1844_s8 = smov [#allocation12]  }
0x17e9   :  { %s1430_s9 = sshll.u32 %s1844_s8, 4  ;;  %s1431_s9 = int_to_ptr.vmem [resolvable:$true] %s1430_s9 }
0x17ea   :  { %s1802_s25 = scalar_lea.vmem %s1431_s9, 256  ;;  %p1807_p12 = scmp.lt.s32.totalorder %s1431_s9, %s1431_s9 }
0x17eb   :  { %p1803_p11 = scmp.ne.s32.totalorder %s1431_s9, %s1802_s25  ;;  %p1808_p13 = scmp.lt.s32.totalorder %s1802_s25, %s1802_s25 }
0x17ed   :  { %p1809_p0 = por %p1808_p13, %p1807_p12 }
0x17ee   :  { %v1697_v3 = vpop.eup %1696 }
0x17ef   :  { %v1284_v53 = vmul.f32 %v1697_v3, %v1278_v40  ;;  %p1810_p1 = pnand %p1809_p0, %p1803_p11 }
0x17f1   :  { %v1293_v42 = vadd.f32 %v1500_v41, %v1284_v53 }
0x17f2   :  { %v1699_v43 = vpop.eup %1698 }
0x17f3   :  { %v1299_v45 = vcombine.high %v1293_v42, %v1293_v42  ;;  %v1306_v46 = vrot.slane %v1293_v42, %v1929_v9  ;;  %v1285_v47 = vmul.f32 %v1699_v43, %v1279_v39 }
0x17f5   :  { %v1313_v48 = vrot.slane %v1299_v45, %v1929_v9  ;;  %v1314_v49 = vcombine.high %v1306_v46, %v1306_v46  ;;  %v1294_v1 = vadd.f32 %v1500_v41, %v1285_v47 }
0x17f7   :  { %v1315_v50 = vcombine.high %v1313_v48, %v1313_v48  ;;  %v1316_v51 = vcombine.high %v1294_v1, %v1294_v1  ;;  %v1323_v52 = vrot.slane %v1294_v1, %v1929_v9  ;;  %v1341_v54 = vcombine.low %v1306_v46, %v1314_v49 }
0x17f9   :  { %v1330_v55 = vrot.slane %v1316_v51, %v1929_v9  ;;  %v1331_v56 = vcombine.high %v1323_v52, %v1323_v52  ;;  %v1350_v57 = vcombine.low %v1313_v48, %v1315_v50  ;;  %v1348_v61 = vrot.slane %v1341_v54, %v1940_v15 }
0x17fb   :  { %v1332_v58 = vcombine.high %v1330_v55, %v1330_v55  ;;  %v1359_v59 = vcombine.low %v1323_v52, %v1331_v56  ;;  %v1357_v60 = vrot.slane %v1350_v57, %v1940_v15 }
0x17fd   :  { %v1368_v62 = vcombine.low %v1330_v55, %v1332_v58  ;;  %v1366_v63 = vrot.slane %v1359_v59, %v1940_v15  ;;  %v1385_v2 = vcombine.low %v1348_v61, %v1357_v60  ;;  %v1501_v4 = vcombine.high %v1348_v61, %v1357_v60 }
0x17ff   :  { %v1375_v0 = vrot.slane %v1368_v62, %v1940_v15  ;;  %v1393_v7 = vrot.slane %v1385_v2, %v1929_v9  ;;  %v1410_v10 = vrot.slane %v1501_v4, %v1929_v9  ;;  %v1700_v15 = vld [vmem:[%s2187_s0] sm:$0xff] }
0x1801   :  { %v1386_v5 = vcombine.low %v1366_v63, %v1375_v0  ;;  %v1502_v6 = vcombine.high %v1366_v63, %v1375_v0 }
0x1803   :  { %v1400_v8 = vrot.slane %v1386_v5, %v1929_v9  ;;  %v1417_v11 = vrot.slane %v1502_v6, %v1929_v9 }
0x1805   :  { %v1401_v12 = vcombine.low %v1393_v7, %v1400_v8  ;;  %v1418_v13 = vcombine.low %v1410_v10, %v1417_v11 }
0x1807   :  { %v1421_v16 = vadd.f32 %v1700_v15, %v1401_v12  ;;  %v1422_v18 = vadd.f32 %v1701_v17, %v1418_v13 }
0x1809   :  { %1423 = vst.msk [vmem:[#allocation12] sm:$0xff] %vm235_vm3, %v1421_v16  ;;  %1424 = vst.msk [vmem:[#allocation12 + $0x8] sm:$0xff] %vm235_vm3, %v1422_v18 }
0x180a   :  { %1813 = shalt.err (!%p1810_p1)
}
0x180b   :  { %s1845_s2 = smov 128   ;;  %s1846_s26 = smov 8  }
0x180c   :  { %1436 = dma.vmem_to_hbm [thread:$0]  %s1431_s9, 256, %s2197_s10, [#allocation8], %s1845_s2, %s1845_s2, %s1846_s26  }
0x180d   :  { %1826 = dma.done.wait [#allocation8], 256  }
0x180e   :  { %1827 = vsyncadd [#allocation8], 4294967040 }
0x180f   :  { %1828 = dma.done.wait [#allocation14], 64  }
0x1810   :  { %1829 = vsyncadd [#allocation14], 4294967232 }
0x1811   :  { %1466 = vsyncpa [#allocation7], 1 }
0x1812   :  { %1467 = vsyncpa [#allocation10], 1 }
0x1813   :  { %1468 = vsyncpa [#allocation8], 1 }
0x1814   :  { %1469 = vsyncpa [#allocation14], 1 }

</bundles_post_ra>
